<compile_context>
chip_gen: v6e
topology: v6e:2x2x1
jax: 0.10.0
libtpu: 0.0.40
codegen_flags: <defaults>
</compile_context>

<pallas_src>
import jax
import jax.numpy as jnp
from jax import lax
from jax.experimental import pallas as pl
from jax.experimental.pallas import tpu as pltpu

LANE = 128                      # lane width; hidden / label dims padded to this
MAX_B_TILE = 128                # sentences per kernel grid step (MXU row fill)
STATIC_UNROLL_MAX_SEQ = 32      # static Python unroll up to this seq length
_VMEM_SOFT_LIMIT = 12 * 2**20   # above this, set vmem_limit_bytes explicitly
_VMEM_HARD_BUDGET = 40 * 2**20  # keep well under v7x's 64 MiB physical VMEM


def _round_up(x, m):
    return (x + m - 1) // m * m


def _vmem_bytes_estimate(S, b_tile, E, G, H_pad, L_pad):
    """Conservative per-chunk VMEM footprint (weights double-buffered)."""
    xproj = S * b_tile * G * 4                                   # f32 scratch
    weights = (E * G + H_pad * G + H_pad * L_pad) * 2 + (G + L_pad) * 4
    embeds = 2 * S * b_tile * E * 2                              # bf16, 2 bufs
    out = 2 * b_tile * L_pad * 4                                 # f32, 2 bufs
    return xproj + 2 * weights + embeds + out


# ----------------------------------------------------------------------------
# Kernel
# ----------------------------------------------------------------------------
def lstm_classifier_kernel(embeds_ref, w_ih_ref, w_hh_ref, b_ref,
                           w_out_ref, b_out_ref, out_ref, xproj_ref):
    """One batch-chunk of b_tile sentences: full recurrence + linear + softmax.

    embeds_ref : (1, S*B, E)  bf16  time-major rows: row t*B + b = (time t, sent b)
    w_ih_ref   : (E, 4*Hp)    bf16  weight_ih_l0.T, gate cols zero-padded to 128
    w_hh_ref   : (Hp, 4*Hp)   bf16  weight_hh_l0.T, padded rows+cols zero
    b_ref      : (1, 4*Hp)    f32   bias_ih + bias_hh, zero in padded cols
    w_out_ref  : (Hp, Lp)     bf16  hidden2label.weight.T, zero padded
    b_out_ref  : (1, Lp)      f32   -1e30 in padded label cols
    out_ref    : (B, Lp)      f32   softmax probabilities (padded lanes == 0)
    xproj_ref  : (S*B, 4*Hp)  f32   VMEM scratch for the precomputed input proj
    """
    B = out_ref.shape[0]
    S = embeds_ref.shape[1] // B
    H = w_hh_ref.shape[0]                       # padded hidden (multiple of 128)

    # (1) Whole-sequence input projection as ONE bf16 MXU matmul (+ f32 bias),
    #     hoisted off the serial per-step dependency chain.
    xproj_ref[...] = (
        jnp.dot(embeds_ref[0], w_ih_ref[...],
                preferred_element_type=jnp.float32)
        + b_ref[...])

    h = jnp.zeros((B, H), jnp.float32)
    c = jnp.zeros((B, H), jnp.float32)

    def cell(x_t, h, c):
        # Only h @ W_hh remains on the per-step critical path; operands bf16,
        # accumulation f32, gate math f32.
        gates = x_t + jnp.dot(h.astype(jnp.bfloat16), w_hh_ref[...],
                              preferred_element_type=jnp.float32)
        # Gate slices are whole 128-lane tiles — no cross-lane realignment.
        i_g = jax.nn.sigmoid(gates[:, 0 * H:1 * H])
        f_g = jax.nn.sigmoid(gates[:, 1 * H:2 * H])
        g_g = jnp.tanh(gates[:, 2 * H:3 * H])
        o_g = jax.nn.sigmoid(gates[:, 3 * H:4 * H])
        c = f_g * c + i_g * g_g
        h = o_g * jnp.tanh(c)
        return h, c

    if S <= STATIC_UNROLL_MAX_SEQ:
        # Short sequences: fully static unroll (no loop/branch overhead).
        for t in range(S):
            h, c = cell(xproj_ref[t * B:(t + 1) * B, :], h, c)
    else:
        # Long sequences: moderately unrolled fori_loop bounds code size and
        # vreg live ranges while keeping LLO scheduling visibility.
        def body(t, carry):
            h, c = carry
            row = pl.multiple_of(t * B, B)
            return cell(xproj_ref[pl.ds(row, B), :], h, c)
        h, c = lax.fori_loop(0, S, body, (h, c), unroll=8)

    # hidden2label(lstm_out[-1]) + softmax(dim=1); padded labels get -1e30 bias
    logits = (jnp.dot(h.astype(jnp.bfloat16), w_out_ref[...],
                      preferred_element_type=jnp.float32)
              + b_out_ref[...])
    m = jnp.max(logits, axis=1, keepdims=True)
    e = jnp.exp(logits - m)
    # Exact reciprocal -> rows sum to 1 (perf cost negligible, EUP not binding).
    out_ref[...] = e * pl.reciprocal(jnp.sum(e, axis=1, keepdims=True),
                                     approx=False)


# ----------------------------------------------------------------------------
# Wrapper
# ----------------------------------------------------------------------------
def lstm_classifier_forward(sentences, packed, *, max_b_tile=MAX_B_TILE):
    """sentences: (S,) or (B, S) int32 token ids.
    Returns (B, label_size) softmax probs ((1, label_size) for a single
    sentence, matching the PyTorch module's forward)."""
    if sentences.ndim == 1:
        sentences = sentences[None, :]
    B, S = sentences.shape

    emb_table = packed["embedding"]
    E = emb_table.shape[1]
    H_pad = packed["w_hh_t"].shape[0]
    G = 4 * H_pad
    L_pad = packed["w_out_t"].shape[1]
    label_size = packed["label_size"]

    # Batch tile: fill MXU rows (up to 128 sentences / step) but shrink if the
    # xproj scratch + resident weights would blow the per-chip VMEM budget.
    b_tile = min(max_b_tile, _round_up(B, 8))
    while (b_tile > 8 and
           _vmem_bytes_estimate(S, b_tile, E, G, H_pad, L_pad)
           > _VMEM_HARD_BUDGET):
        b_tile = max(8, _round_up(b_tile // 2, 8))
    b_pad = _round_up(B, b_tile)
    num_chunks = b_pad // b_tile
    if b_pad != B:
        sentences = jnp.pad(sentences, ((0, b_pad - B), (0, 0)))

    # Fold the time-major layout into the embedding gather: permute the tiny
    # int32 id matrix, then one jnp.take yields (chunk, t*b_tile + b, E)
    # directly (no transpose of the full (B,S,E) embedding tensor).
    ids = sentences.reshape(num_chunks, b_tile, S).transpose(0, 2, 1)
    ids = ids.reshape(num_chunks, S * b_tile)
    embeds = jnp.take(emb_table, ids, axis=0).astype(jnp.bfloat16)

    est = _vmem_bytes_estimate(S, b_tile, E, G, H_pad, L_pad)
    vmem_limit = (min(int(est * 1.5), 48 * 2**20)
                  if est > _VMEM_SOFT_LIMIT else None)

    out = pl.pallas_call(
        lstm_classifier_kernel,
        out_shape=jax.ShapeDtypeStruct((b_pad, L_pad), jnp.float32),
        grid_spec=pltpu.PrefetchScalarGridSpec(
            num_scalar_prefetch=0,
            grid=(num_chunks,),                        # batch chunks
            in_specs=[
                pl.BlockSpec((1, S * b_tile, E), lambda i: (i, 0, 0)),
                pl.BlockSpec((E, G), lambda i: (0, 0)),
                pl.BlockSpec((H_pad, G), lambda i: (0, 0)),
                pl.BlockSpec((1, G), lambda i: (0, 0)),
                pl.BlockSpec((H_pad, L_pad), lambda i: (0, 0)),
                pl.BlockSpec((1, L_pad), lambda i: (0, 0)),
            ],
            out_specs=pl.BlockSpec((b_tile, L_pad), lambda i: (i, 0)),
            scratch_shapes=[pltpu.VMEM((S * b_tile, G), jnp.float32)],
        ),
        compiler_params=pltpu.CompilerParams(
            dimension_semantics=("parallel",),         # v7x dual-TC over chunks
            vmem_limit_bytes=vmem_limit),
    )(embeds, packed["w_ih_t"], packed["w_hh_t"], packed["b_gates"],
      packed["w_out_t"], packed["b_out"])

    return out[:B, :label_size]


# ----------------------------------------------------------------------------
# Parameters (PyTorch-layout init) + packing into the padded kernel layout
# ----------------------------------------------------------------------------
def init_params(key, vocab_size, embedding_dim, hidden_dim, label_size):
    ks = jax.random.split(key, 7)
    bound = 1.0 / (hidden_dim ** 0.5)
    u = lambda k, shape: jax.random.uniform(k, shape, jnp.float32, -bound, bound)
    return {
        "embedding": jax.random.normal(ks[0], (vocab_size, embedding_dim),
                                       jnp.float32),
        "w_ih": u(ks[1], (4 * hidden_dim, embedding_dim)),   # PyTorch weight_ih_l0
        "w_hh": u(ks[2], (4 * hidden_dim, hidden_dim)),      # PyTorch weight_hh_l0
        "b_ih": u(ks[3], (4 * hidden_dim,)),
        "b_hh": u(ks[4], (4 * hidden_dim,)),
        "w_out": u(ks[5], (label_size, hidden_dim)),         # hidden2label.weight
        "b_out": u(ks[6], (label_size,)),
    }


def _pad_gate_cols(w_t, hidden, hidden_pad):
    """(in, 4*hidden) -> (in, 4*hidden_pad): each gate's columns zero-padded so
    in-kernel gate slices are whole 128-lane tiles."""
    gates = jnp.split(w_t, 4, axis=1)
    return jnp.concatenate(
        [jnp.pad(g, ((0, 0), (0, hidden_pad - hidden))) for g in gates], axis=1)


def pack_params(params):
    hidden = params["w_hh"].shape[1]
    label = params["w_out"].shape[0]
    h_pad = _round_up(hidden, LANE)
    l_pad = _round_up(label, LANE)

    w_ih_t = _pad_gate_cols(params["w_ih"].T, hidden, h_pad)          # (E, 4*Hp)
    w_hh_t = _pad_gate_cols(params["w_hh"].T, hidden, h_pad)          # (H, 4*Hp)
    w_hh_t = jnp.pad(w_hh_t, ((0, h_pad - hidden), (0, 0)))           # (Hp, 4*Hp)
    b_gates = _pad_gate_cols((params["b_ih"] + params["b_hh"])[None, :],
                             hidden, h_pad)                           # (1, 4*Hp)
    w_out_t = jnp.pad(params["w_out"].T,
                      ((0, h_pad - hidden), (0, l_pad - label)))      # (Hp, Lp)
    # Padded label columns get a huge negative bias -> exp() == 0 in the softmax.
    b_out = jnp.pad(params["b_out"][None, :], ((0, 0), (0, l_pad - label)),
                    constant_values=-1e30)

    # --- padding invariants the kernel's correctness relies on -------------
    for g in range(4):
        pad_sl = slice(g * h_pad + hidden, (g + 1) * h_pad)
        assert bool(jnp.all(w_ih_t[:, pad_sl] == 0)), "w_ih gate pad not zero"
        assert bool(jnp.all(w_hh_t[:, pad_sl] == 0)), "w_hh gate pad not zero"
        assert bool(jnp.all(b_gates[:, pad_sl] == 0)), "bias gate pad not zero"
    assert bool(jnp.all(w_hh_t[hidden:, :] == 0)), "w_hh padded rows not zero"
    assert bool(jnp.all(w_out_t[hidden:, :] == 0)), "w_out padded rows not zero"
    assert bool(jnp.all(w_out_t[:, label:] == 0)), "w_out padded cols not zero"
    assert bool(jnp.all(b_out[:, label:] == -1e30)), "b_out pad not -1e30"

    return {
        "embedding": params["embedding"].astype(jnp.float32),
        "w_ih_t": w_ih_t.astype(jnp.bfloat16),     # bf16 MXU operands
        "w_hh_t": w_hh_t.astype(jnp.bfloat16),
        "b_gates": b_gates.astype(jnp.float32),    # biases stay f32
        "w_out_t": w_out_t.astype(jnp.bfloat16),
        "b_out": b_out.astype(jnp.float32),
        "label_size": label,
    }


# ----------------------------------------------------------------------------
# Pure-JAX references (for verification)
# ----------------------------------------------------------------------------
def lstm_classifier_ref(sentence, params):
    """Exact PyTorch semantics, all f32."""
    emb = params["embedding"][sentence].astype(jnp.float32)          # (S, E)
    H = params["w_hh"].shape[1]
    bias = params["b_ih"] + params["b_hh"]
    h = jnp.zeros((1, H), jnp.float32)
    c = jnp.zeros((1, H), jnp.float32)
    for t in range(emb.shape[0]):
        gates = emb[t:t + 1] @ params["w_ih"].T + h @ params["w_hh"].T + bias
        i_g = jax.nn.sigmoid(gates[:, 0 * H:1 * H])
        f_g = jax.nn.sigmoid(gates[:, 1 * H:2 * H])
        g_g = jnp.tanh(gates[:, 2 * H:3 * H])
        o_g = jax.nn.sigmoid(gates[:, 3 * H:4 * H])
        c = f_g * c + i_g * g_g
        h = o_g * jnp.tanh(c)
    logits = h @ params["w_out"].T + params["b_out"]
    return jax.nn.softmax(logits, axis=1)                            # (1, label)


def lstm_classifier_ref_bf16(sentence, params):
    """Mirrors the kernel's numerics exactly: bf16 matmul operands, f32
    accumulation, f32 gate math / cell state / softmax.  Used for a TIGHT
    correctness check so padding/layout bugs can't hide behind bf16 error."""
    bf16 = jnp.bfloat16
    emb = params["embedding"][sentence].astype(bf16)                 # (S, E)
    w_ih = params["w_ih"].T.astype(bf16)                             # (E, 4H)
    w_hh = params["w_hh"].T.astype(bf16)                             # (H, 4H)
    w_out = params["w_out"].T.astype(bf16)                           # (H, L)
    bias = (params["b_ih"] + params["b_hh"]).astype(jnp.float32)
    H = params["w_hh"].shape[1]
    xproj = jnp.dot(emb, w_ih, preferred_element_type=jnp.float32) + bias
    h = jnp.zeros((1, H), jnp.float32)
    c = jnp.zeros((1, H), jnp.float32)
    for t in range(emb.shape[0]):
        gates = xproj[t:t + 1] + jnp.dot(h.astype(bf16), w_hh,
                                         preferred_element_type=jnp.float32)
        i_g = jax.nn.sigmoid(gates[:, 0 * H:1 * H])
        f_g = jax.nn.sigmoid(gates[:, 1 * H:2 * H])
        g_g = jnp.tanh(gates[:, 2 * H:3 * H])
        o_g = jax.nn.sigmoid(gates[:, 3 * H:4 * H])
        c = f_g * c + i_g * g_g
        h = o_g * jnp.tanh(c)
    logits = (jnp.dot(h.astype(bf16), w_out, preferred_element_type=jnp.float32)
              + params["b_out"])
    return jax.nn.softmax(logits, axis=1)                            # (1, label)


# ----------------------------------------------------------------------------
if __name__ == "__main__":
    vocab_size, embedding_dim, hidden_dim, label_size = 100, 32, 32, 4
    seq_len, batch = 8, 8

    key = jax.random.PRNGKey(0)
    k_param, k_tok = jax.random.split(key)
    params = init_params(k_param, vocab_size, embedding_dim, hidden_dim,
                         label_size)
    packed = pack_params(params)

    sentences = jax.random.randint(k_tok, (batch, seq_len), 0, vocab_size,
                                   dtype=jnp.int32)

    # Batched kernel call (throughput path).
    probs = jax.block_until_ready(lstm_classifier_forward(sentences, packed))
    # Single-sentence call == the module's forward(sentence) -> (1, label_size).
    probs_single = jax.block_until_ready(
        lstm_classifier_forward(sentences[0], packed))

    ref_f32 = jnp.concatenate(
        [lstm_classifier_ref(sentences[b], params) for b in range(batch)],
        axis=0)
    ref_b16 = jnp.concatenate(
        [lstm_classifier_ref_bf16(sentences[b], params) for b in range(batch)],
        axis=0)

    assert probs.shape == (batch, label_size)
    assert probs_single.shape == (1, label_size)
    assert bool(jnp.all(jnp.isfinite(probs)))
    # Exact reciprocal -> rows sum to 1 (tight).
    assert float(jnp.max(jnp.abs(jnp.sum(probs, axis=1) - 1.0))) < 1e-5
    # Tight check vs. the bf16-numerics-matched reference (catches padding /
    # layout / gate-order bugs; only differs by accumulation order).
    assert float(jnp.max(jnp.abs(probs - ref_b16))) < 2e-3
    # Check vs. exact f32 PyTorch semantics; bound is set by the bf16 rounding
    # of the matmul operands, not by kernel error.
    assert float(jnp.max(jnp.abs(probs - ref_f32))) < 3e-2
    # Single-sentence path must agree with row 0 of the batched path.
    assert float(jnp.max(jnp.abs(probs_single - probs[:1]))) < 1e-6

    print("KERNEL_OK")
</pallas_src>

<mosaic_0001>
module attributes {stable_mosaic.version = 11 : i64} {
  func.func @lstm_classifier_kernel(%arg0: i32, %arg1: memref<1x64x32xbf16, #tpu.memory_space<vmem>>, %arg2: memref<32x512xbf16, #tpu.memory_space<vmem>>, %arg3: memref<128x512xbf16, #tpu.memory_space<vmem>>, %arg4: memref<1x512xf32, #tpu.memory_space<vmem>>, %arg5: memref<128x128xbf16, #tpu.memory_space<vmem>>, %arg6: memref<1x128xf32, #tpu.memory_space<vmem>>, %arg7: memref<8x128xf32, #tpu.memory_space<vmem>>, %arg8: memref<64x512xf32, #tpu.memory_space<vmem>>) attributes {dimension_semantics = [#tpu.dimension_semantics<parallel>], iteration_bounds = array<i64: 1>, scalar_prefetch = 0 : i64, scratch_operands = 1 : i64, tpu.core_type = #tpu.core_type<tc>, window_params = [{transform_indices = @transform_0, window_bounds = array<i64: 1, 64, 32>}, {pipeline_mode = #tpu.pipeline_mode<synchronous>, transform_indices = @transform_1, window_bounds = array<i64: 32, 512>}, {pipeline_mode = #tpu.pipeline_mode<synchronous>, transform_indices = @transform_2, window_bounds = array<i64: 128, 512>}, {pipeline_mode = #tpu.pipeline_mode<synchronous>, transform_indices = @transform_3, window_bounds = array<i64: 1, 512>}, {pipeline_mode = #tpu.pipeline_mode<synchronous>, transform_indices = @transform_4, window_bounds = array<i64: 128, 128>}, {pipeline_mode = #tpu.pipeline_mode<synchronous>, transform_indices = @transform_5, window_bounds = array<i64: 1, 128>}, {transform_indices = @transform_6, window_bounds = array<i64: 8, 128>}]} {
    %c0 = arith.constant 0 : index
    %c0_0 = arith.constant 0 : index
    %c0_1 = arith.constant 0 : index
    %0 = vector.load %arg1[%c0, %c0_0, %c0_1] : memref<1x64x32xbf16, #tpu.memory_space<vmem>>, vector<1x64x32xbf16>
    %1 = vector.shape_cast %0 : vector<1x64x32xbf16> to vector<64x32xbf16>
    %c0_2 = arith.constant 0 : index
    %c0_3 = arith.constant 0 : index
    %2 = vector.load %arg2[%c0_2, %c0_3] : memref<32x512xbf16, #tpu.memory_space<vmem>>, vector<32x512xbf16>
    %cst = arith.constant dense<0.000000e+00> : vector<64x512xf32>
    %3 = tpu.matmul %1, %2, %cst {dimension_numbers = #tpu.dot_dimension_numbers<[1], [0], [0], [1], [0, 0, 1, 1], [], []>} : vector<64x32xbf16>, vector<32x512xbf16>, vector<64x512xf32> -> vector<64x512xf32>
    %c0_4 = arith.constant 0 : index
    %c0_5 = arith.constant 0 : index
    %4 = vector.load %arg4[%c0_4, %c0_5] : memref<1x512xf32, #tpu.memory_space<vmem>>, vector<1x512xf32>
    %5 = vector.broadcast %4 : vector<1x512xf32> to vector<64x512xf32>
    %6 = arith.addf %3, %5 : vector<64x512xf32>
    %c0_6 = arith.constant 0 : index
    %c0_7 = arith.constant 0 : index
    %7 = vector.load %arg8[%c0_6, %c0_7] : memref<64x512xf32, #tpu.memory_space<vmem>>, vector<64x512xf32>
    tpu.vector_store %arg8[%c0_6, %c0_7], %6 {strides = array<i32>} : memref<64x512xf32, #tpu.memory_space<vmem>>, vector<64x512xf32>,
    %cst_8 = arith.constant 0.000000e+00 : f32
    %8 = vector.broadcast %cst_8 : f32 to vector<8x128xf32>
    %cst_9 = arith.constant 0.000000e+00 : f32
    %9 = vector.broadcast %cst_9 : f32 to vector<8x128xf32>
    %c0_10 = arith.constant 0 : index
    %c0_11 = arith.constant 0 : index
    %10 = vector.load %arg8[%c0_10, %c0_11] : memref<64x512xf32, #tpu.memory_space<vmem>>, vector<8x512xf32>
    %11 = arith.truncf %8 : vector<8x128xf32> to vector<8x128xbf16>
    %c0_12 = arith.constant 0 : index
    %c0_13 = arith.constant 0 : index
    %12 = vector.load %arg3[%c0_12, %c0_13] : memref<128x512xbf16, #tpu.memory_space<vmem>>, vector<128x512xbf16>
    %cst_14 = arith.constant dense<0.000000e+00> : vector<8x512xf32>
    %13 = tpu.matmul %11, %12, %cst_14 {dimension_numbers = #tpu.dot_dimension_numbers<[1], [0], [0], [1], [0, 0, 1, 1], [], []>} : vector<8x128xbf16>, vector<128x512xbf16>, vector<8x512xf32> -> vector<8x512xf32>
    %14 = arith.addf %10, %13 : vector<8x512xf32>
    %15 = vector.extract_strided_slice %14 {offsets = [0, 0], sizes = [8, 128], strides = [1, 1]} : vector<8x512xf32> to vector<8x128xf32>
    %16 = arith.negf %15 : vector<8x128xf32>
    %17 = math.exp %16 : vector<8x128xf32>
    %cst_15 = arith.constant 1.000000e+00 : f32
    %18 = vector.broadcast %cst_15 : f32 to vector<8x128xf32>
    %19 = arith.addf %18, %17 : vector<8x128xf32>
    %20 = arith.divf %18, %19 : vector<8x128xf32>
    %21 = vector.extract_strided_slice %14 {offsets = [0, 128], sizes = [8, 128], strides = [1, 1]} : vector<8x512xf32> to vector<8x128xf32>
    %22 = arith.negf %21 : vector<8x128xf32>
    %23 = math.exp %22 : vector<8x128xf32>
    %cst_16 = arith.constant 1.000000e+00 : f32
    %24 = vector.broadcast %cst_16 : f32 to vector<8x128xf32>
    %25 = arith.addf %24, %23 : vector<8x128xf32>
    %26 = arith.divf %24, %25 : vector<8x128xf32>
    %27 = vector.extract_strided_slice %14 {offsets = [0, 256], sizes = [8, 128], strides = [1, 1]} : vector<8x512xf32> to vector<8x128xf32>
    %28 = math.tanh %27 : vector<8x128xf32>
    %29 = vector.extract_strided_slice %14 {offsets = [0, 384], sizes = [8, 128], strides = [1, 1]} : vector<8x512xf32> to vector<8x128xf32>
    %30 = arith.negf %29 : vector<8x128xf32>
    %31 = math.exp %30 : vector<8x128xf32>
    %cst_17 = arith.constant 1.000000e+00 : f32
    %32 = vector.broadcast %cst_17 : f32 to vector<8x128xf32>
    %33 = arith.addf %32, %31 : vector<8x128xf32>
    %34 = arith.divf %32, %33 : vector<8x128xf32>
    %35 = arith.mulf %26, %9 : vector<8x128xf32>
    %36 = arith.mulf %20, %28 : vector<8x128xf32>
    %37 = arith.addf %35, %36 : vector<8x128xf32>
    %38 = math.tanh %37 : vector<8x128xf32>
    %39 = arith.mulf %34, %38 : vector<8x128xf32>
    %c8 = arith.constant 8 : index
    %c0_18 = arith.constant 0 : index
    %40 = vector.load %arg8[%c8, %c0_18] : memref<64x512xf32, #tpu.memory_space<vmem>>, vector<8x512xf32>
    %41 = arith.truncf %39 : vector<8x128xf32> to vector<8x128xbf16>
    %c0_19 = arith.constant 0 : index
    %c0_20 = arith.constant 0 : index
    %42 = vector.load %arg3[%c0_19, %c0_20] : memref<128x512xbf16, #tpu.memory_space<vmem>>, vector<128x512xbf16>
    %cst_21 = arith.constant dense<0.000000e+00> : vector<8x512xf32>
    %43 = tpu.matmul %41, %42, %cst_21 {dimension_numbers = #tpu.dot_dimension_numbers<[1], [0], [0], [1], [0, 0, 1, 1], [], []>} : vector<8x128xbf16>, vector<128x512xbf16>, vector<8x512xf32> -> vector<8x512xf32>
    %44 = arith.addf %40, %43 : vector<8x512xf32>
    %45 = vector.extract_strided_slice %44 {offsets = [0, 0], sizes = [8, 128], strides = [1, 1]} : vector<8x512xf32> to vector<8x128xf32>
    %46 = arith.negf %45 : vector<8x128xf32>
    %47 = math.exp %46 : vector<8x128xf32>
    %cst_22 = arith.constant 1.000000e+00 : f32
    %48 = vector.broadcast %cst_22 : f32 to vector<8x128xf32>
    %49 = arith.addf %48, %47 : vector<8x128xf32>
    %50 = arith.divf %48, %49 : vector<8x128xf32>
    %51 = vector.extract_strided_slice %44 {offsets = [0, 128], sizes = [8, 128], strides = [1, 1]} : vector<8x512xf32> to vector<8x128xf32>
    %52 = arith.negf %51 : vector<8x128xf32>
    %53 = math.exp %52 : vector<8x128xf32>
    %cst_23 = arith.constant 1.000000e+00 : f32
    %54 = vector.broadcast %cst_23 : f32 to vector<8x128xf32>
    %55 = arith.addf %54, %53 : vector<8x128xf32>
    %56 = arith.divf %54, %55 : vector<8x128xf32>
    %57 = vector.extract_strided_slice %44 {offsets = [0, 256], sizes = [8, 128], strides = [1, 1]} : vector<8x512xf32> to vector<8x128xf32>
    %58 = math.tanh %57 : vector<8x128xf32>
    %59 = vector.extract_strided_slice %44 {offsets = [0, 384], sizes = [8, 128], strides = [1, 1]} : vector<8x512xf32> to vector<8x128xf32>
    %60 = arith.negf %59 : vector<8x128xf32>
    %61 = math.exp %60 : vector<8x128xf32>
    %cst_24 = arith.constant 1.000000e+00 : f32
    %62 = vector.broadcast %cst_24 : f32 to vector<8x128xf32>
    %63 = arith.addf %62, %61 : vector<8x128xf32>
    %64 = arith.divf %62, %63 : vector<8x128xf32>
    %65 = arith.mulf %56, %37 : vector<8x128xf32>
    %66 = arith.mulf %50, %58 : vector<8x128xf32>
    %67 = arith.addf %65, %66 : vector<8x128xf32>
    %68 = math.tanh %67 : vector<8x128xf32>
    %69 = arith.mulf %64, %68 : vector<8x128xf32>
    %c16 = arith.constant 16 : index
    %c0_25 = arith.constant 0 : index
    %70 = vector.load %arg8[%c16, %c0_25] : memref<64x512xf32, #tpu.memory_space<vmem>>, vector<8x512xf32>
    %71 = arith.truncf %69 : vector<8x128xf32> to vector<8x128xbf16>
    %c0_26 = arith.constant 0 : index
    %c0_27 = arith.constant 0 : index
    %72 = vector.load %arg3[%c0_26, %c0_27] : memref<128x512xbf16, #tpu.memory_space<vmem>>, vector<128x512xbf16>
    %cst_28 = arith.constant dense<0.000000e+00> : vector<8x512xf32>
    %73 = tpu.matmul %71, %72, %cst_28 {dimension_numbers = #tpu.dot_dimension_numbers<[1], [0], [0], [1], [0, 0, 1, 1], [], []>} : vector<8x128xbf16>, vector<128x512xbf16>, vector<8x512xf32> -> vector<8x512xf32>
    %74 = arith.addf %70, %73 : vector<8x512xf32>
    %75 = vector.extract_strided_slice %74 {offsets = [0, 0], sizes = [8, 128], strides = [1, 1]} : vector<8x512xf32> to vector<8x128xf32>
    %76 = arith.negf %75 : vector<8x128xf32>
    %77 = math.exp %76 : vector<8x128xf32>
    %cst_29 = arith.constant 1.000000e+00 : f32
    %78 = vector.broadcast %cst_29 : f32 to vector<8x128xf32>
    %79 = arith.addf %78, %77 : vector<8x128xf32>
    %80 = arith.divf %78, %79 : vector<8x128xf32>
    %81 = vector.extract_strided_slice %74 {offsets = [0, 128], sizes = [8, 128], strides = [1, 1]} : vector<8x512xf32> to vector<8x128xf32>
    %82 = arith.negf %81 : vector<8x128xf32>
    %83 = math.exp %82 : vector<8x128xf32>
    %cst_30 = arith.constant 1.000000e+00 : f32
    %84 = vector.broadcast %cst_30 : f32 to vector<8x128xf32>
    %85 = arith.addf %84, %83 : vector<8x128xf32>
    %86 = arith.divf %84, %85 : vector<8x128xf32>
    %87 = vector.extract_strided_slice %74 {offsets = [0, 256], sizes = [8, 128], strides = [1, 1]} : vector<8x512xf32> to vector<8x128xf32>
    %88 = math.tanh %87 : vector<8x128xf32>
    %89 = vector.extract_strided_slice %74 {offsets = [0, 384], sizes = [8, 128], strides = [1, 1]} : vector<8x512xf32> to vector<8x128xf32>
    %90 = arith.negf %89 : vector<8x128xf32>
    %91 = math.exp %90 : vector<8x128xf32>
    %cst_31 = arith.constant 1.000000e+00 : f32
    %92 = vector.broadcast %cst_31 : f32 to vector<8x128xf32>
    %93 = arith.addf %92, %91 : vector<8x128xf32>
    %94 = arith.divf %92, %93 : vector<8x128xf32>
    %95 = arith.mulf %86, %67 : vector<8x128xf32>
    %96 = arith.mulf %80, %88 : vector<8x128xf32>
    %97 = arith.addf %95, %96 : vector<8x128xf32>
    %98 = math.tanh %97 : vector<8x128xf32>
    %99 = arith.mulf %94, %98 : vector<8x128xf32>
    %c24 = arith.constant 24 : index
    %c0_32 = arith.constant 0 : index
    %100 = vector.load %arg8[%c24, %c0_32] : memref<64x512xf32, #tpu.memory_space<vmem>>, vector<8x512xf32>
    %101 = arith.truncf %99 : vector<8x128xf32> to vector<8x128xbf16>
    %c0_33 = arith.constant 0 : index
    %c0_34 = arith.constant 0 : index
    %102 = vector.load %arg3[%c0_33, %c0_34] : memref<128x512xbf16, #tpu.memory_space<vmem>>, vector<128x512xbf16>
    %cst_35 = arith.constant dense<0.000000e+00> : vector<8x512xf32>
    %103 = tpu.matmul %101, %102, %cst_35 {dimension_numbers = #tpu.dot_dimension_numbers<[1], [0], [0], [1], [0, 0, 1, 1], [], []>} : vector<8x128xbf16>, vector<128x512xbf16>, vector<8x512xf32> -> vector<8x512xf32>
    %104 = arith.addf %100, %103 : vector<8x512xf32>
    %105 = vector.extract_strided_slice %104 {offsets = [0, 0], sizes = [8, 128], strides = [1, 1]} : vector<8x512xf32> to vector<8x128xf32>
    %106 = arith.negf %105 : vector<8x128xf32>
    %107 = math.exp %106 : vector<8x128xf32>
    %cst_36 = arith.constant 1.000000e+00 : f32
    %108 = vector.broadcast %cst_36 : f32 to vector<8x128xf32>
    %109 = arith.addf %108, %107 : vector<8x128xf32>
    %110 = arith.divf %108, %109 : vector<8x128xf32>
    %111 = vector.extract_strided_slice %104 {offsets = [0, 128], sizes = [8, 128], strides = [1, 1]} : vector<8x512xf32> to vector<8x128xf32>
    %112 = arith.negf %111 : vector<8x128xf32>
    %113 = math.exp %112 : vector<8x128xf32>
    %cst_37 = arith.constant 1.000000e+00 : f32
    %114 = vector.broadcast %cst_37 : f32 to vector<8x128xf32>
    %115 = arith.addf %114, %113 : vector<8x128xf32>
    %116 = arith.divf %114, %115 : vector<8x128xf32>
    %117 = vector.extract_strided_slice %104 {offsets = [0, 256], sizes = [8, 128], strides = [1, 1]} : vector<8x512xf32> to vector<8x128xf32>
    %118 = math.tanh %117 : vector<8x128xf32>
    %119 = vector.extract_strided_slice %104 {offsets = [0, 384], sizes = [8, 128], strides = [1, 1]} : vector<8x512xf32> to vector<8x128xf32>
    %120 = arith.negf %119 : vector<8x128xf32>
    %121 = math.exp %120 : vector<8x128xf32>
    %cst_38 = arith.constant 1.000000e+00 : f32
    %122 = vector.broadcast %cst_38 : f32 to vector<8x128xf32>
    %123 = arith.addf %122, %121 : vector<8x128xf32>
    %124 = arith.divf %122, %123 : vector<8x128xf32>
    %125 = arith.mulf %116, %97 : vector<8x128xf32>
    %126 = arith.mulf %110, %118 : vector<8x128xf32>
    %127 = arith.addf %125, %126 : vector<8x128xf32>
    %128 = math.tanh %127 : vector<8x128xf32>
    %129 = arith.mulf %124, %128 : vector<8x128xf32>
    %c32 = arith.constant 32 : index
    %c0_39 = arith.constant 0 : index
    %130 = vector.load %arg8[%c32, %c0_39] : memref<64x512xf32, #tpu.memory_space<vmem>>, vector<8x512xf32>
    %131 = arith.truncf %129 : vector<8x128xf32> to vector<8x128xbf16>
    %c0_40 = arith.constant 0 : index
    %c0_41 = arith.constant 0 : index
    %132 = vector.load %arg3[%c0_40, %c0_41] : memref<128x512xbf16, #tpu.memory_space<vmem>>, vector<128x512xbf16>
    %cst_42 = arith.constant dense<0.000000e+00> : vector<8x512xf32>
    %133 = tpu.matmul %131, %132, %cst_42 {dimension_numbers = #tpu.dot_dimension_numbers<[1], [0], [0], [1], [0, 0, 1, 1], [], []>} : vector<8x128xbf16>, vector<128x512xbf16>, vector<8x512xf32> -> vector<8x512xf32>
    %134 = arith.addf %130, %133 : vector<8x512xf32>
    %135 = vector.extract_strided_slice %134 {offsets = [0, 0], sizes = [8, 128], strides = [1, 1]} : vector<8x512xf32> to vector<8x128xf32>
    %136 = arith.negf %135 : vector<8x128xf32>
    %137 = math.exp %136 : vector<8x128xf32>
    %cst_43 = arith.constant 1.000000e+00 : f32
    %138 = vector.broadcast %cst_43 : f32 to vector<8x128xf32>
    %139 = arith.addf %138, %137 : vector<8x128xf32>
    %140 = arith.divf %138, %139 : vector<8x128xf32>
    %141 = vector.extract_strided_slice %134 {offsets = [0, 128], sizes = [8, 128], strides = [1, 1]} : vector<8x512xf32> to vector<8x128xf32>
    %142 = arith.negf %141 : vector<8x128xf32>
    %143 = math.exp %142 : vector<8x128xf32>
    %cst_44 = arith.constant 1.000000e+00 : f32
    %144 = vector.broadcast %cst_44 : f32 to vector<8x128xf32>
    %145 = arith.addf %144, %143 : vector<8x128xf32>
    %146 = arith.divf %144, %145 : vector<8x128xf32>
    %147 = vector.extract_strided_slice %134 {offsets = [0, 256], sizes = [8, 128], strides = [1, 1]} : vector<8x512xf32> to vector<8x128xf32>
    %148 = math.tanh %147 : vector<8x128xf32>
    %149 = vector.extract_strided_slice %134 {offsets = [0, 384], sizes = [8, 128], strides = [1, 1]} : vector<8x512xf32> to vector<8x128xf32>
    %150 = arith.negf %149 : vector<8x128xf32>
    %151 = math.exp %150 : vector<8x128xf32>
    %cst_45 = arith.constant 1.000000e+00 : f32
    %152 = vector.broadcast %cst_45 : f32 to vector<8x128xf32>
    %153 = arith.addf %152, %151 : vector<8x128xf32>
    %154 = arith.divf %152, %153 : vector<8x128xf32>
    %155 = arith.mulf %146, %127 : vector<8x128xf32>
    %156 = arith.mulf %140, %148 : vector<8x128xf32>
    %157 = arith.addf %155, %156 : vector<8x128xf32>
    %158 = math.tanh %157 : vector<8x128xf32>
    %159 = arith.mulf %154, %158 : vector<8x128xf32>
    %c40 = arith.constant 40 : index
    %c0_46 = arith.constant 0 : index
    %160 = vector.load %arg8[%c40, %c0_46] : memref<64x512xf32, #tpu.memory_space<vmem>>, vector<8x512xf32>
    %161 = arith.truncf %159 : vector<8x128xf32> to vector<8x128xbf16>
    %c0_47 = arith.constant 0 : index
    %c0_48 = arith.constant 0 : index
    %162 = vector.load %arg3[%c0_47, %c0_48] : memref<128x512xbf16, #tpu.memory_space<vmem>>, vector<128x512xbf16>
    %cst_49 = arith.constant dense<0.000000e+00> : vector<8x512xf32>
    %163 = tpu.matmul %161, %162, %cst_49 {dimension_numbers = #tpu.dot_dimension_numbers<[1], [0], [0], [1], [0, 0, 1, 1], [], []>} : vector<8x128xbf16>, vector<128x512xbf16>, vector<8x512xf32> -> vector<8x512xf32>
    %164 = arith.addf %160, %163 : vector<8x512xf32>
    %165 = vector.extract_strided_slice %164 {offsets = [0, 0], sizes = [8, 128], strides = [1, 1]} : vector<8x512xf32> to vector<8x128xf32>
    %166 = arith.negf %165 : vector<8x128xf32>
    %167 = math.exp %166 : vector<8x128xf32>
    %cst_50 = arith.constant 1.000000e+00 : f32
    %168 = vector.broadcast %cst_50 : f32 to vector<8x128xf32>
    %169 = arith.addf %168, %167 : vector<8x128xf32>
    %170 = arith.divf %168, %169 : vector<8x128xf32>
    %171 = vector.extract_strided_slice %164 {offsets = [0, 128], sizes = [8, 128], strides = [1, 1]} : vector<8x512xf32> to vector<8x128xf32>
    %172 = arith.negf %171 : vector<8x128xf32>
    %173 = math.exp %172 : vector<8x128xf32>
    %cst_51 = arith.constant 1.000000e+00 : f32
    %174 = vector.broadcast %cst_51 : f32 to vector<8x128xf32>
    %175 = arith.addf %174, %173 : vector<8x128xf32>
    %176 = arith.divf %174, %175 : vector<8x128xf32>
    %177 = vector.extract_strided_slice %164 {offsets = [0, 256], sizes = [8, 128], strides = [1, 1]} : vector<8x512xf32> to vector<8x128xf32>
    %178 = math.tanh %177 : vector<8x128xf32>
    %179 = vector.extract_strided_slice %164 {offsets = [0, 384], sizes = [8, 128], strides = [1, 1]} : vector<8x512xf32> to vector<8x128xf32>
    %180 = arith.negf %179 : vector<8x128xf32>
    %181 = math.exp %180 : vector<8x128xf32>
    %cst_52 = arith.constant 1.000000e+00 : f32
    %182 = vector.broadcast %cst_52 : f32 to vector<8x128xf32>
    %183 = arith.addf %182, %181 : vector<8x128xf32>
    %184 = arith.divf %182, %183 : vector<8x128xf32>
    %185 = arith.mulf %176, %157 : vector<8x128xf32>
    %186 = arith.mulf %170, %178 : vector<8x128xf32>
    %187 = arith.addf %185, %186 : vector<8x128xf32>
    %188 = math.tanh %187 : vector<8x128xf32>
    %189 = arith.mulf %184, %188 : vector<8x128xf32>
    %c48 = arith.constant 48 : index
    %c0_53 = arith.constant 0 : index
    %190 = vector.load %arg8[%c48, %c0_53] : memref<64x512xf32, #tpu.memory_space<vmem>>, vector<8x512xf32>
    %191 = arith.truncf %189 : vector<8x128xf32> to vector<8x128xbf16>
    %c0_54 = arith.constant 0 : index
    %c0_55 = arith.constant 0 : index
    %192 = vector.load %arg3[%c0_54, %c0_55] : memref<128x512xbf16, #tpu.memory_space<vmem>>, vector<128x512xbf16>
    %cst_56 = arith.constant dense<0.000000e+00> : vector<8x512xf32>
    %193 = tpu.matmul %191, %192, %cst_56 {dimension_numbers = #tpu.dot_dimension_numbers<[1], [0], [0], [1], [0, 0, 1, 1], [], []>} : vector<8x128xbf16>, vector<128x512xbf16>, vector<8x512xf32> -> vector<8x512xf32>
    %194 = arith.addf %190, %193 : vector<8x512xf32>
    %195 = vector.extract_strided_slice %194 {offsets = [0, 0], sizes = [8, 128], strides = [1, 1]} : vector<8x512xf32> to vector<8x128xf32>
    %196 = arith.negf %195 : vector<8x128xf32>
    %197 = math.exp %196 : vector<8x128xf32>
    %cst_57 = arith.constant 1.000000e+00 : f32
    %198 = vector.broadcast %cst_57 : f32 to vector<8x128xf32>
    %199 = arith.addf %198, %197 : vector<8x128xf32>
    %200 = arith.divf %198, %199 : vector<8x128xf32>
    %201 = vector.extract_strided_slice %194 {offsets = [0, 128], sizes = [8, 128], strides = [1, 1]} : vector<8x512xf32> to vector<8x128xf32>
    %202 = arith.negf %201 : vector<8x128xf32>
    %203 = math.exp %202 : vector<8x128xf32>
    %cst_58 = arith.constant 1.000000e+00 : f32
    %204 = vector.broadcast %cst_58 : f32 to vector<8x128xf32>
    %205 = arith.addf %204, %203 : vector<8x128xf32>
    %206 = arith.divf %204, %205 : vector<8x128xf32>
    %207 = vector.extract_strided_slice %194 {offsets = [0, 256], sizes = [8, 128], strides = [1, 1]} : vector<8x512xf32> to vector<8x128xf32>
    %208 = math.tanh %207 : vector<8x128xf32>
    %209 = vector.extract_strided_slice %194 {offsets = [0, 384], sizes = [8, 128], strides = [1, 1]} : vector<8x512xf32> to vector<8x128xf32>
    %210 = arith.negf %209 : vector<8x128xf32>
    %211 = math.exp %210 : vector<8x128xf32>
    %cst_59 = arith.constant 1.000000e+00 : f32
    %212 = vector.broadcast %cst_59 : f32 to vector<8x128xf32>
    %213 = arith.addf %212, %211 : vector<8x128xf32>
    %214 = arith.divf %212, %213 : vector<8x128xf32>
    %215 = arith.mulf %206, %187 : vector<8x128xf32>
    %216 = arith.mulf %200, %208 : vector<8x128xf32>
    %217 = arith.addf %215, %216 : vector<8x128xf32>
    %218 = math.tanh %217 : vector<8x128xf32>
    %219 = arith.mulf %214, %218 : vector<8x128xf32>
    %c56 = arith.constant 56 : index
    %c0_60 = arith.constant 0 : index
    %220 = vector.load %arg8[%c56, %c0_60] : memref<64x512xf32, #tpu.memory_space<vmem>>, vector<8x512xf32>
    %221 = arith.truncf %219 : vector<8x128xf32> to vector<8x128xbf16>
    %c0_61 = arith.constant 0 : index
    %c0_62 = arith.constant 0 : index
    %222 = vector.load %arg3[%c0_61, %c0_62] : memref<128x512xbf16, #tpu.memory_space<vmem>>, vector<128x512xbf16>
    %cst_63 = arith.constant dense<0.000000e+00> : vector<8x512xf32>
    %223 = tpu.matmul %221, %222, %cst_63 {dimension_numbers = #tpu.dot_dimension_numbers<[1], [0], [0], [1], [0, 0, 1, 1], [], []>} : vector<8x128xbf16>, vector<128x512xbf16>, vector<8x512xf32> -> vector<8x512xf32>
    %224 = arith.addf %220, %223 : vector<8x512xf32>
    %225 = vector.extract_strided_slice %224 {offsets = [0, 0], sizes = [8, 128], strides = [1, 1]} : vector<8x512xf32> to vector<8x128xf32>
    %226 = arith.negf %225 : vector<8x128xf32>
    %227 = math.exp %226 : vector<8x128xf32>
    %cst_64 = arith.constant 1.000000e+00 : f32
    %228 = vector.broadcast %cst_64 : f32 to vector<8x128xf32>
    %229 = arith.addf %228, %227 : vector<8x128xf32>
    %230 = arith.divf %228, %229 : vector<8x128xf32>
    %231 = vector.extract_strided_slice %224 {offsets = [0, 128], sizes = [8, 128], strides = [1, 1]} : vector<8x512xf32> to vector<8x128xf32>
    %232 = arith.negf %231 : vector<8x128xf32>
    %233 = math.exp %232 : vector<8x128xf32>
    %cst_65 = arith.constant 1.000000e+00 : f32
    %234 = vector.broadcast %cst_65 : f32 to vector<8x128xf32>
    %235 = arith.addf %234, %233 : vector<8x128xf32>
    %236 = arith.divf %234, %235 : vector<8x128xf32>
    %237 = vector.extract_strided_slice %224 {offsets = [0, 256], sizes = [8, 128], strides = [1, 1]} : vector<8x512xf32> to vector<8x128xf32>
    %238 = math.tanh %237 : vector<8x128xf32>
    %239 = vector.extract_strided_slice %224 {offsets = [0, 384], sizes = [8, 128], strides = [1, 1]} : vector<8x512xf32> to vector<8x128xf32>
    %240 = arith.negf %239 : vector<8x128xf32>
    %241 = math.exp %240 : vector<8x128xf32>
    %cst_66 = arith.constant 1.000000e+00 : f32
    %242 = vector.broadcast %cst_66 : f32 to vector<8x128xf32>
    %243 = arith.addf %242, %241 : vector<8x128xf32>
    %244 = arith.divf %242, %243 : vector<8x128xf32>
    %245 = arith.mulf %236, %217 : vector<8x128xf32>
    %246 = arith.mulf %230, %238 : vector<8x128xf32>
    %247 = arith.addf %245, %246 : vector<8x128xf32>
    %248 = math.tanh %247 : vector<8x128xf32>
    %249 = arith.mulf %244, %248 : vector<8x128xf32>
    %250 = arith.truncf %249 : vector<8x128xf32> to vector<8x128xbf16>
    %c0_67 = arith.constant 0 : index
    %c0_68 = arith.constant 0 : index
    %251 = vector.load %arg5[%c0_67, %c0_68] : memref<128x128xbf16, #tpu.memory_space<vmem>>, vector<128x128xbf16>
    %cst_69 = arith.constant dense<0.000000e+00> : vector<8x128xf32>
    %252 = tpu.matmul %250, %251, %cst_69 {dimension_numbers = #tpu.dot_dimension_numbers<[1], [0], [0], [1], [0, 0, 1, 1], [], []>} : vector<8x128xbf16>, vector<128x128xbf16>, vector<8x128xf32> -> vector<8x128xf32>
    %c0_70 = arith.constant 0 : index
    %c0_71 = arith.constant 0 : index
    %253 = vector.load %arg6[%c0_70, %c0_71] : memref<1x128xf32, #tpu.memory_space<vmem>>, vector<1x128xf32>
    %254 = vector.broadcast %253 : vector<1x128xf32> to vector<8x128xf32>
    %255 = arith.addf %252, %254 : vector<8x128xf32>
    %cst_72 = arith.constant dense<0xFF800000> : vector<8xf32>
    %256 = vector.multi_reduction <maximumf>, %255, %cst_72 [1] : vector<8x128xf32> to vector<8xf32>
    %257 = vector.shape_cast %256 : vector<8xf32> to vector<8x1xf32>
    %258 = vector.broadcast %257 : vector<8x1xf32> to vector<8x128xf32>
    %259 = arith.subf %255, %258 : vector<8x128xf32>
    %260 = math.exp %259 : vector<8x128xf32>
    %cst_73 = arith.constant dense<0.000000e+00> : vector<8xf32>
    %261 = vector.multi_reduction <add>, %260, %cst_73 [1] : vector<8x128xf32> to vector<8xf32>
    %262 = vector.shape_cast %261 : vector<8xf32> to vector<8x1xf32>
    %263 = tpu.reciprocal %262 : vector<8x1xf32> -> vector<8x1xf32>
    %264 = vector.broadcast %263 : vector<8x1xf32> to vector<8x128xf32>
    %265 = arith.mulf %260, %264 : vector<8x128xf32>
    %c0_74 = arith.constant 0 : index
    %c0_75 = arith.constant 0 : index
    %266 = vector.load %arg7[%c0_74, %c0_75] : memref<8x128xf32, #tpu.memory_space<vmem>>, vector<8x128xf32>
    tpu.vector_store %arg7[%c0_74, %c0_75], %265 {strides = array<i32>} : memref<8x128xf32, #tpu.memory_space<vmem>>, vector<8x128xf32>,
    return
  }
  func.func @transform_0(%arg0: i32) -> (i32, i32, i32) {
    %c0_i32 = arith.constant 0 : i32
    %c0_i32_0 = arith.constant 0 : i32
    %c0_i32_1 = arith.constant 0 : i32
    return %arg0, %c0_i32, %c0_i32_0 : i32, i32, i32
  }
  func.func @transform_1(%arg0: i32) -> (i32, i32) {
    %c0_i32 = arith.constant 0 : i32
    %c0_i32_0 = arith.constant 0 : i32
    %c0_i32_1 = arith.constant 0 : i32
    return %c0_i32, %c0_i32_0 : i32, i32
  }
  func.func @transform_2(%arg0: i32) -> (i32, i32) {
    %c0_i32 = arith.constant 0 : i32
    %c0_i32_0 = arith.constant 0 : i32
    %c0_i32_1 = arith.constant 0 : i32
    return %c0_i32, %c0_i32_0 : i32, i32
  }
  func.func @transform_3(%arg0: i32) -> (i32, i32) {
    %c0_i32 = arith.constant 0 : i32
    %c0_i32_0 = arith.constant 0 : i32
    %c0_i32_1 = arith.constant 0 : i32
    return %c0_i32, %c0_i32_0 : i32, i32
  }
  func.func @transform_4(%arg0: i32) -> (i32, i32) {
    %c0_i32 = arith.constant 0 : i32
    %c0_i32_0 = arith.constant 0 : i32
    %c0_i32_1 = arith.constant 0 : i32
    return %c0_i32, %c0_i32_0 : i32, i32
  }
  func.func @transform_5(%arg0: i32) -> (i32, i32) {
    %c0_i32 = arith.constant 0 : i32
    %c0_i32_0 = arith.constant 0 : i32
    %c0_i32_1 = arith.constant 0 : i32
    return %c0_i32, %c0_i32_0 : i32, i32
  }
  func.func @transform_6(%arg0: i32) -> (i32, i32) {
    %c0_i32 = arith.constant 0 : i32
    %c0_i32_0 = arith.constant 0 : i32
    return %arg0, %c0_i32 : i32, i32
  }
}

</mosaic_0001>

<bundles_post_ra>
// kernel: tpu_custom_call.1
= control target key start
LH: loop header
LB: loop body
LE: loop exit
PB: predicated region body
PF: predicated region fallthrough
CT: control target
= control target key end

     0   :  { %11 = vsyncpa [#allocation4], 0  ;;  %s2683_s0 = inlined_call_operand.vmem [shape: bf16[1,64,32], index: 0, kind: input, shape index: {}]   ;;  %s2684_s1 = inlined_call_operand.hbm [shape: bf16[32,512], index: 1, kind: input, shape index: {}]   ;;  %s2685_s2 = inlined_call_operand.hbm [shape: bf16[128,512], index: 2, kind: input, shape index: {}]   ;;  %s2686_s3 = inlined_call_operand.vmem [shape: f32[1,512], index: 3, kind: input, shape index: {}]   ;;  %s2687_s4 = inlined_call_operand.hbm [shape: bf16[128,128], index: 4, kind: input, shape index: {}]   ;;  %s2688_s5 = inlined_call_operand.vmem [shape: f32[1,128], index: 5, kind: input, shape index: {}]   ;;  %s2689_s6 = inlined_call_operand.hbm [shape: f32[8,128], index: 6, kind: output, shape index: {}]  }
   0x1   :  { %12 = vsyncpa [#allocation7], 0 }
   0x2   :  { %13 = vsyncpa [#allocation5], 0  ;;  %s2051_s21 = smov [#allocation6]   ;;  %s2052_s23 = smov [#allocation3]  }
   0x3   :  { %s33_s22 = sshll.u32 %s2051_s21, 4  ;;  %s21_s24 = sshll.u32 %s2052_s23, 4  ;;  %s34_s22 = int_to_ptr.vmem [resolvable:$true] %s33_s22  ;;  %s22_s24 = int_to_ptr.vmem [resolvable:$true] %s21_s24 }
   0x4   :  { %s1973_s25 = scalar_lea.vmem %s34_s22, 4096  ;;  %p1978_p1 = scmp.lt.s32.totalorder %s34_s22, %s34_s22 }
   0x5   :  { %p1974_p0 = scmp.ne.s32.totalorder %s34_s22, %s1973_s25  ;;  %p1979_p2 = scmp.lt.s32.totalorder %s1973_s25, %s1973_s25 }
   0x7   :  { %p1980_p3 = por %p1979_p2, %p1978_p1 }
   0x9   :  { %p1981_p4 = pnand %p1980_p3, %p1974_p0 }
   0xb   :  { %1984 = shalt.err (!%p1981_p4)
}
   0xc   :  { %s2053_s26 = smov 256   ;;  %s2054_s27 = smov 16  }
   0xd   :  { %39 = dma.hbm_to_vmem [thread:$0]  %s2685_s2, 4096, %s34_s22, [#allocation7], %s2053_s26, %s2053_s26, %s2054_s27  }
   0xe   :  { %s1993_s30 = scalar_lea.vmem %s22_s24, 1024  ;;  %p1998_p6 = scmp.lt.s32.totalorder %s22_s24, %s22_s24 }
   0xf   :  { %p1994_p5 = scmp.ne.s32.totalorder %s22_s24, %s1993_s30  ;;  %p1999_p7 = scmp.lt.s32.totalorder %s1993_s30, %s1993_s30 }
  0x11   :  { %p2000_p8 = por %p1999_p7, %p1998_p6 }
  0x13   :  { %p2001_p9 = pnand %p2000_p8, %p1994_p5 }
  0x15   :  { %2004 = shalt.err (!%p2001_p9)
}
  0x16   :  { %27 = dma.hbm_to_vmem [thread:$0]  %s2684_s1, 1024, %s22_s24, [#allocation4], %s2053_s26, %s2053_s26, %s2054_s27  }
  0x17   :  { %s2055_s9 = smov [#allocation8]  }
  0x18   :  { %s47_s10 = sshll.u32 %s2055_s9, 4  ;;  %s48_s10 = int_to_ptr.vmem [resolvable:$true] %s47_s10 }
  0x19   :  { %s2013_s11 = scalar_lea.vmem %s48_s10, 1024  ;;  %p2018_p11 = scmp.lt.s32.totalorder %s48_s10, %s48_s10 }
  0x1a   :  { %p2014_p10 = scmp.ne.s32.totalorder %s48_s10, %s2013_s11  ;;  %p2019_p12 = scmp.lt.s32.totalorder %s2013_s11, %s2013_s11 }
  0x1c   :  { %p2020_p13 = por %p2019_p12, %p2018_p11 }
  0x1e   :  { %p2021_p0 = pnand %p2020_p13, %p2014_p10 }
  0x20   :  { %2024 = shalt.err (!%p2021_p0)
}
  0x21   :  { %s2056_s2 = smov 64   ;;  %s2057_s12 = smov 4  }
  0x22   :  { %53 = dma.hbm_to_vmem [thread:$0]  %s2687_s4, 1024, %s48_s10, [#allocation7], %s2056_s2, %s2056_s2, %s2057_s12  }
  0x23   :  { %2045 = dma.done.wait [#allocation4], 1024  }
  0x24   :  { %2046 = vsyncadd [#allocation4], 4294966272 }
  0x25   :  { %2047 = dma.done.wait [#allocation7], 5120  }
  0x26   :  { %2048 = vsyncadd [#allocation7], 4294962176  ;;  %v2690_v0 = vmov 0   ;;  %v1729_v1 = vld [vmem:[#allocation3 + $0x24] ss:$16 sps:$4 sm:$0xff]   ;;  %vm164_vm0 = vcmask 261120   ;;  %v84_v45 = vlaneseq }
  0x27   :  { %209 = vmatprep.mubr.bf16.mxu0 %v2690_v0  ;;  %282 = vmatprep.mubr.bf16.mxu1 %v2690_v0  ;;  %v1731_v2 = vld [vmem:[#allocation3 + $0x2c] ss:$16 sps:$4 sm:$0xff]   ;;  %v1733_v3 = vld [vmem:[#allocation3 + $0x20] ss:$16 sps:$4 sm:$0xff]   ;;  %v1734_v4 = vld [vmem:[#allocation3 + $0x28] ss:$16 sps:$4 sm:$0xff]  }
  0x28   :  { %189 = vmatprep.subr.bf16.mxu0 %v1729_v1  ;;  %262 = vmatprep.subr.bf16.mxu1 %v1731_v2  ;;  %v1735_v5 = vld [vmem:[#allocation3 + $0x4] ss:$16 sps:$4 sm:$0xff]   ;;  %v1737_v6 = vld [vmem:[#allocation3 + $0xc] ss:$16 sps:$4 sm:$0xff]   ;;  %v1739_v7 = vld [vmem:[#allocation3] ss:$16 sps:$4 sm:$0xff]  }
  0x29   :  { %190 = vmatpush1.bf16.msra.mxu0 %v1733_v3  ;;  %263 = vmatpush1.bf16.msra.mxu1 %v1734_v4  ;;  %v1740_v8 = vld [vmem:[#allocation3 + $0x8] ss:$16 sps:$4 sm:$0xff]   ;;  %v1741_v9 = vld [vmem:[%s2683_s0] sm:$0xff]   ;;  %v2113_v11 = vld [vmem:[#allocation6 + $0xec] ss:$16 sps:$4 sm:$0xff]   ;;  %v85_v46 = vshrl.u32 %v84_v45, 7 }
  0x2a   :  { %191 = vmatprep.subr.bf16.mxu0 %v1735_v5  ;;  %264 = vmatprep.subr.bf16.mxu1 %v1737_v6  ;;  %v2111_v10 = vld [vmem:[#allocation6 + $0xe4] ss:$16 sps:$4 sm:$0xff]   ;;  %v2115_v12 = vld [vmem:[#allocation6 + $0xe0] ss:$16 sps:$4 sm:$0xff]   ;;  %v2117_v13 = vld [vmem:[#allocation6 + $0xe8] ss:$16 sps:$4 sm:$0xff]  }
  0x2b   :  { %v2120_v14 = vld [vmem:[#allocation6 + $0xc4] ss:$16 sps:$4 sm:$0xff]   ;;  %v2123_v15 = vld [vmem:[#allocation6 + $0xcc] ss:$16 sps:$4 sm:$0xff]   ;;  %v2127_v16 = vld [vmem:[#allocation6 + $0xc0] ss:$16 sps:$4 sm:$0xff]  }
  0x2c   :  { %v2131_v17 = vld [vmem:[#allocation6 + $0xc8] ss:$16 sps:$4 sm:$0xff]   ;;  %v2135_v18 = vld [vmem:[#allocation6 + $0xa4] ss:$16 sps:$4 sm:$0xff]   ;;  %v2142_v20 = vld [vmem:[#allocation6 + $0xac] ss:$16 sps:$4 sm:$0xff]  }
  0x2d   :  { %192 = vmatpush1.bf16.msra.mxu0 %v1739_v7  ;;  %265 = vmatpush1.bf16.msra.mxu1 %v1740_v8  ;;  %v1754_v19 = vld [vmem:[%s2683_s0 + $0x8] sm:$0xff]   ;;  %v2144_v21 = vld [vmem:[#allocation6 + $0xa0] ss:$16 sps:$4 sm:$0xff]   ;;  %v2152_v23 = vld [vmem:[#allocation6 + $0x84] ss:$16 sps:$4 sm:$0xff]   ;;  %v94_v47 = vsub.s32 2, %v85_v46 }
  0x2e   :  { %551 = vmatprep.subr.bf16.mxu0 %v2111_v10  ;;  %592 = vmatprep.subr.bf16.mxu1 %v2113_v11  ;;  %v2148_v22 = vld [vmem:[#allocation6 + $0xa8] ss:$16 sps:$4 sm:$0xff]   ;;  %v2154_v24 = vld [vmem:[#allocation6 + $0x8c] ss:$16 sps:$4 sm:$0xff]   ;;  %v2158_v25 = vld [vmem:[#allocation6 + $0x80] ss:$16 sps:$4 sm:$0xff]  }
  0x2f   :  { %v2162_v26 = vld [vmem:[#allocation6 + $0x88] ss:$16 sps:$4 sm:$0xff]   ;;  %v2166_v27 = vld [vmem:[#allocation6 + $0x64] ss:$16 sps:$4 sm:$0xff]   ;;  %v2168_v28 = vld [vmem:[#allocation6 + $0x6c] ss:$16 sps:$4 sm:$0xff]  }
  0x30   :  { %1616 = vmatmul.mubr.msk.bf16.vlgmr.msra.gmra.mxu0 %vm164_vm0, %v1741_v9  ;;  %1620 = vmatmul.mubr.msk.bf16.vlgmr.msra.gmra.mxu1 %vm164_vm0, %v1741_v9  ;;  %v1767_v29 = vld [vmem:[%s2683_s0 + $0x10] sm:$0xff]   ;;  %v2177_v31 = vld [vmem:[#allocation6 + $0x68] ss:$16 sps:$4 sm:$0xff]   ;;  %v2185_v33 = vld [vmem:[#allocation6 + $0x4c] ss:$16 sps:$4 sm:$0xff]   ;;  %v86_v48 = vsub.s32 0, %v85_v46 }
  0x31   :  { %552 = vmatpush1.bf16.msra.mxu0 %v2115_v12  ;;  %593 = vmatpush1.bf16.msra.mxu1 %v2117_v13  ;;  %v2175_v30 = vld [vmem:[#allocation6 + $0x60] ss:$16 sps:$4 sm:$0xff]   ;;  %v2181_v32 = vld [vmem:[#allocation6 + $0x44] ss:$16 sps:$4 sm:$0xff]   ;;  %v2191_v35 = vld [vmem:[#allocation6 + $0x48] ss:$16 sps:$4 sm:$0xff]  }
  0x32   :  { %553 = vmatprep.subr.bf16.mxu0 %v2120_v14  ;;  %594 = vmatprep.subr.bf16.mxu1 %v2123_v15  ;;  %v2189_v34 = vld [vmem:[#allocation6 + $0x40] ss:$16 sps:$4 sm:$0xff]   ;;  %v2195_v36 = vld [vmem:[#allocation6 + $0x24] ss:$16 sps:$4 sm:$0xff]   ;;  %v2199_v37 = vld [vmem:[#allocation6 + $0x2c] ss:$16 sps:$4 sm:$0xff]  }
  0x33   :  { %219 = vmatprep.mubr.bf16.mxu0 %v2690_v0  ;;  %292 = vmatprep.mubr.bf16.mxu1 %v2690_v0  ;;  %v1780_v38 = vld [vmem:[%s2683_s0 + $0x18] sm:$0xff]   ;;  %v2206_v39 = vld [vmem:[#allocation6 + $0x20] ss:$16 sps:$4 sm:$0xff]   ;;  %v2210_v41 = vld [vmem:[#allocation6 + $0x4] ss:$16 sps:$4 sm:$0xff]   ;;  %v98_v49 = vsub.s32 3, %v85_v46 }
  0x34   :  { %v2208_v40 = vld [vmem:[#allocation6 + $0x28] ss:$16 sps:$4 sm:$0xff]   ;;  %v2212_v42 = vld [vmem:[#allocation6 + $0xc] ss:$16 sps:$4 sm:$0xff]   ;;  %v2222_v43 = vld [vmem:[#allocation6] ss:$16 sps:$4 sm:$0xff]  }
  0x35   :  { %554 = vmatpush1.bf16.msra.mxu0 %v2127_v16  ;;  %595 = vmatpush1.bf16.msra.mxu1 %v2131_v17  ;;  %v2224_v44 = vld [vmem:[#allocation6 + $0x8] ss:$16 sps:$4 sm:$0xff]   ;;  %v82_v50 = vld [vmem:[%s2686_s3] sm:$0xf]  ;;  %v90_v54 = vsub.s32 1, %v85_v46  ;;  %vm2060_vm1 = vmmov 0  }
  0x36   :  { %555 = vmatprep.subr.bf16.mxu0 %v2135_v18  ;;  %596 = vmatprep.subr.bf16.mxu1 %v2142_v20  ;;  %v2277_v53 = vrot.slane %v82_v50, %v94_v47  ;;  %v87_v57 = vrot.slane %v82_v50, %v86_v48  ;;  %v2283_v58 = vrot.slane %v82_v50, %v98_v49  ;;  %s2061_s23 = smov [#allocation9]  }
  0x37   :  { %v91_v61 = vrot.slane %v82_v50, %v90_v54  ;;  %s1594_s24 = sshll.u32 %s2061_s23, 4  ;;  %s1595_s24 = int_to_ptr.vmem [resolvable:$true] %s1594_s24 }
  0x38   :  { %1617 = vmatmul.mubr.msk.bf16.gmra.mxu0 %vm164_vm0, %v1754_v19  ;;  %1621 = vmatmul.mubr.msk.bf16.gmra.mxu1 %vm164_vm0, %v1754_v19  ;;  %p2030_p2 = scmp.lt.s32.totalorder %s1595_s24, %s1595_s24 }
  0x39   :  { %556 = vmatpush1.bf16.msra.mxu0 %v2144_v21  ;;  %597 = vmatpush1.bf16.msra.mxu1 %v2148_v22 }
  0x3a   :  { %557 = vmatprep.subr.bf16.mxu0 %v2152_v23  ;;  %598 = vmatprep.subr.bf16.mxu1 %v2154_v24 }
  0x3b   :  { %229 = vmatprep.mubr.bf16.mxu0 %v2690_v0  ;;  %302 = vmatprep.mubr.bf16.mxu1 %v2690_v0 }
  0x3d   :  { %558 = vmatpush1.bf16.msra.mxu0 %v2158_v25  ;;  %599 = vmatpush1.bf16.msra.mxu1 %v2162_v26 }
  0x3e   :  { %559 = vmatprep.subr.bf16.mxu0 %v2166_v27  ;;  %600 = vmatprep.subr.bf16.mxu1 %v2168_v28 }
  0x40   :  { %1618 = vmatmul.mubr.msk.bf16.gmra.mxu0 %vm164_vm0, %v1767_v29  ;;  %1622 = vmatmul.mubr.msk.bf16.gmra.mxu1 %vm164_vm0, %v1767_v29 }
  0x41   :  { %560 = vmatpush1.bf16.msra.mxu0 %v2175_v30  ;;  %601 = vmatpush1.bf16.msra.mxu1 %v2177_v31 }
  0x42   :  { %561 = vmatprep.subr.bf16.mxu0 %v2181_v32  ;;  %602 = vmatprep.subr.bf16.mxu1 %v2185_v33 }
  0x43   :  { %239 = vmatprep.mubr.bf16.mxu0 %v2690_v0  ;;  %312 = vmatprep.mubr.bf16.mxu1 %v2690_v0 }
  0x45   :  { %562 = vmatpush1.bf16.msra.mxu0 %v2189_v34  ;;  %603 = vmatpush1.bf16.msra.mxu1 %v2191_v35 }
  0x46   :  { %563 = vmatprep.subr.bf16.mxu0 %v2195_v36  ;;  %604 = vmatprep.subr.bf16.mxu1 %v2199_v37 }
  0x48   :  { %1619 = vmatmul.mubr.msk.bf16.gmra.mxu0 %vm164_vm0, %v1780_v38  ;;  %1623 = vmatmul.mubr.msk.bf16.gmra.mxu1 %vm164_vm0, %v1780_v38 }
  0x49   :  { %564 = vmatpush1.bf16.msra.mxu0 %v2206_v39  ;;  %605 = vmatpush1.bf16.msra.mxu1 %v2208_v40 }
  0x4a   :  { %565 = vmatprep.subr.bf16.mxu0 %v2210_v41  ;;  %606 = vmatprep.subr.bf16.mxu1 %v2212_v42 }
  0x4b   :  { %583 = vmatprep.mubr.bf16.mxu0 %v2690_v0  ;;  %624 = vmatprep.mubr.bf16.mxu1 %v2690_v0 }
  0x4d   :  { %566 = vmatpush1.bf16.msra.mxu0 %v2222_v43  ;;  %607 = vmatpush1.bf16.msra.mxu1 %v2224_v44 }
  0x4e   :  { %666 = vmatprep.subr.bf16.mxu0 %v2111_v10  ;;  %707 = vmatprep.subr.bf16.mxu1 %v2113_v11 }
  0x50   :  { %584 = vmatmul.mubr.bf16.vlgmr.msra.gmra.mxu0 %v2690_v0  ;;  %625 = vmatmul.mubr.bf16.vlgmr.msra.gmra.mxu1 %v2690_v0 }
  0x51   :  { %667 = vmatpush1.bf16.msra.mxu0 %v2115_v12  ;;  %708 = vmatpush1.bf16.msra.mxu1 %v2117_v13 }
  0x52   :  { %668 = vmatprep.subr.bf16.mxu0 %v2120_v14  ;;  %709 = vmatprep.subr.bf16.mxu1 %v2123_v15 }
  0x53   :  { %698 = vmatprep.mubr.bf16.mxu0 %v2690_v0  ;;  %739 = vmatprep.mubr.bf16.mxu1 %v2690_v0 }
  0x55   :  { %669 = vmatpush1.bf16.msra.mxu0 %v2127_v16  ;;  %710 = vmatpush1.bf16.msra.mxu1 %v2131_v17 }
  0x56   :  { %670 = vmatprep.subr.bf16.mxu0 %v2135_v18  ;;  %711 = vmatprep.subr.bf16.mxu1 %v2142_v20 }
  0x59   :  { %671 = vmatpush1.bf16.msra.mxu0 %v2144_v21  ;;  %712 = vmatpush1.bf16.msra.mxu1 %v2148_v22 }
  0x5a   :  { %672 = vmatprep.subr.bf16.mxu0 %v2152_v23  ;;  %713 = vmatprep.subr.bf16.mxu1 %v2154_v24 }
  0x5d   :  { %673 = vmatpush1.bf16.msra.mxu0 %v2158_v25  ;;  %714 = vmatpush1.bf16.msra.mxu1 %v2162_v26 }
  0x5e   :  { %674 = vmatprep.subr.bf16.mxu0 %v2166_v27  ;;  %715 = vmatprep.subr.bf16.mxu1 %v2168_v28 }
  0x61   :  { %675 = vmatpush1.bf16.msra.mxu0 %v2175_v30  ;;  %716 = vmatpush1.bf16.msra.mxu1 %v2177_v31 }
  0x62   :  { %676 = vmatprep.subr.bf16.mxu0 %v2181_v32  ;;  %717 = vmatprep.subr.bf16.mxu1 %v2185_v33 }
  0x65   :  { %677 = vmatpush1.bf16.msra.mxu0 %v2189_v34  ;;  %718 = vmatpush1.bf16.msra.mxu1 %v2191_v35 }
  0x66   :  { %678 = vmatprep.subr.bf16.mxu0 %v2195_v36  ;;  %719 = vmatprep.subr.bf16.mxu1 %v2199_v37 }
  0x69   :  { %679 = vmatpush1.bf16.msra.mxu0 %v2206_v39  ;;  %720 = vmatpush1.bf16.msra.mxu1 %v2208_v40 }
  0x6a   :  { %680 = vmatprep.subr.bf16.mxu0 %v2210_v41  ;;  %721 = vmatprep.subr.bf16.mxu1 %v2212_v42 }
  0x6d   :  { %681 = vmatpush1.bf16.msra.mxu0 %v2222_v43  ;;  %722 = vmatpush1.bf16.msra.mxu1 %v2224_v44 }
  0x6e   :  { %781 = vmatprep.subr.bf16.mxu0 %v2111_v10  ;;  %822 = vmatprep.subr.bf16.mxu1 %v2113_v11 }
  0xf0   :  { %v2273_v51 = vpop.f32.mrf.mxu0  ;;  %v2275_v52 = vpop.f32.mrf.mxu1 }
  0xf2   :  { %v2279_v55 = vpop.f32.mrf.mxu0  ;;  %v2281_v56 = vpop.f32.mrf.mxu1 }
  0xf4   :  { %v215_v59 = vpop.f32.mrf.mxu0  ;;  %v288_v60 = vpop.f32.mrf.mxu1 }
  0xf5   :  { %v2285_v62 = vadd.f32 %v215_v59, %v87_v57  ;;  %v2288_v63 = vadd.f32 %v288_v60, %v2277_v53 }
  0xf6   :  { %v217_v1 = vpop.f32.mrf.mxu0  ;;  %v290_v2 = vpop.f32.mrf.mxu1 }
  0xf7   :  { %v2290_v3 = vadd.f32 %v217_v1, %v91_v61  ;;  %v2293_v4 = vadd.f32 %v290_v2, %v2283_v58 }
  0xf8   :  { %v221_v5 = vpop.f32.mrf.mxu0  ;;  %v294_v6 = vpop.f32.mrf.mxu1 }
  0xf9   :  { %v2295_v7 = vadd.f32 %v221_v5, %v87_v57  ;;  %v2298_v8 = vadd.f32 %v294_v6, %v2277_v53 }
  0xfa   :  { %v223_v9 = vpop.f32.mrf.mxu0  ;;  %v296_v19 = vpop.f32.mrf.mxu1 }
  0xfb   :  { %2692 = vst [vmem:[#allocation13_spill] sm:$0xff] %v2298_v8  ;;  %v2300_v29 = vadd.f32 %v223_v9, %v91_v61  ;;  %v2303_v38 = vadd.f32 %v296_v19, %v2283_v58 }
  0xfc   :  { %v225_v45 = vpop.f32.mrf.mxu0  ;;  %v298_v46 = vpop.f32.mrf.mxu1 }
  0xfd   :  { %v2305_v47 = vadd.f32 %v225_v45, %v87_v57  ;;  %v2308_v48 = vadd.f32 %v298_v46, %v2277_v53 }
  0xfe   :  { %v227_v49 = vpop.f32.mrf.mxu0  ;;  %v300_v50 = vpop.f32.mrf.mxu1 }
  0xff   :  { %2693 = vst [vmem:[#allocation14_spill] sm:$0xff] %v2305_v47  ;;  %2694 = vst [vmem:[#allocation15_spill] sm:$0xff] %v2308_v48  ;;  %v2310_v54 = vadd.f32 %v227_v49, %v91_v61  ;;  %v2313_v59 = vadd.f32 %v300_v50, %v2283_v58 }
 0x100   :  { %v231_v60 = vpop.f32.mrf.mxu0  ;;  %v304_v1 = vpop.f32.mrf.mxu1 }
 0x101   :  { %2695 = vst [vmem:[#allocation16_spill] sm:$0xff] %v2310_v54  ;;  %2696 = vst [vmem:[#allocation17_spill] sm:$0xff] %v2313_v59  ;;  %v2315_v2 = vadd.f32 %v231_v60, %v87_v57  ;;  %v2318_v5 = vadd.f32 %v304_v1, %v2277_v53 }
 0x102   :  { %v233_v6 = vpop.f32.mrf.mxu0  ;;  %v306_v9 = vpop.f32.mrf.mxu1 }
 0x103   :  { %2697 = vst [vmem:[#allocation18_spill] sm:$0xff] %v2315_v2  ;;  %2698 = vst [vmem:[#allocation19_spill] sm:$0xff] %v2318_v5  ;;  %v2320_v19 = vadd.f32 %v233_v6, %v91_v61  ;;  %v2323_v45 = vadd.f32 %v306_v9, %v2283_v58 }
 0x104   :  { %v235_v46 = vpop.f32.mrf.mxu0  ;;  %v308_v49 = vpop.f32.mrf.mxu1 }
 0x105   :  { %2699 = vst [vmem:[#allocation20_spill] sm:$0xff] %v2320_v19  ;;  %2700 = vst [vmem:[#allocation21_spill] sm:$0xff] %v2323_v45  ;;  %v2325_v0 = vadd.f32 %v235_v46, %v87_v57  ;;  %v2328_v50 = vadd.f32 %v308_v49, %v2277_v53 }
 0x106   :  { %v237_v48 = vpop.f32.mrf.mxu0  ;;  %v310_v60 = vpop.f32.mrf.mxu1 }
 0x107   :  { %2701 = vst [vmem:[#allocation22_spill] sm:$0xff] %v2325_v0  ;;  %2702 = vst [vmem:[#allocation23_spill] sm:$0xff] %v2328_v50  ;;  %v2330_v2 = vadd.f32 %v237_v48, %v91_v61  ;;  %v2333_v1 = vadd.f32 %v310_v60, %v2283_v58 }
 0x108   :  { %v241_v5 = vpop.f32.mrf.mxu0  ;;  %v314_v6 = vpop.f32.mrf.mxu1 }
 0x109   :  { %2703 = vst [vmem:[#allocation24_spill] sm:$0xff] %v2330_v2  ;;  %2704 = vst [vmem:[#allocation25_spill] sm:$0xff] %v2333_v1  ;;  %v2335_v19 = vadd.f32 %v241_v5, %v87_v57  ;;  %v2338_v9 = vadd.f32 %v314_v6, %v2277_v53 }
 0x10a   :  { %v243_v45 = vpop.f32.mrf.mxu0  ;;  %v316_v46 = vpop.f32.mrf.mxu1 }
 0x10b   :  { %2705 = vst [vmem:[#allocation26_spill] sm:$0xff] %v2335_v19  ;;  %2706 = vst [vmem:[#allocation27_spill] sm:$0xff] %v2338_v9  ;;  %v2340_v0 = vadd.f32 %v243_v45, %v91_v61  ;;  %v2343_v49 = vadd.f32 %v316_v46, %v2283_v58  ;;  %v212_v19 = vadd.f32 %v2273_v51, %v87_v57 }
 0x10c   :  { %v245_v50 = vpop.f32.mrf.mxu0  ;;  %v318_v48 = vpop.f32.mrf.mxu1  ;;  %v214_v46 = vadd.f32 %v2279_v55, %v91_v61 }
 0x10d   :  { %2707 = vst [vmem:[#allocation28_spill] sm:$0xff] %v2340_v0  ;;  %2708 = vst [vmem:[#allocation29_spill] sm:$0xff] %v2343_v49  ;;  %v2345_v2 = vadd.f32 %v245_v50, %v87_v57  ;;  %v2348_v60 = vadd.f32 %v318_v48, %v2277_v53  ;;  %v287_v57 = vadd.f32 %v2281_v56, %v2283_v58 }
 0x10e   :  { %v247_v1 = vpop.f32.mrf.mxu0  ;;  %v320_v5 = vpop.f32.mrf.mxu1 }
 0x10f   :  { %2709 = vst [vmem:[#allocation30_spill] sm:$0xff] %v2345_v2  ;;  %2710 = vst [vmem:[#allocation31_spill] sm:$0xff] %v2348_v60  ;;  %v2351_v6 = vadd.f32 %v247_v1, %v91_v61  ;;  %v2354_v9 = vadd.f32 %v320_v5, %v2283_v58  ;;  %v285_v5 = vadd.f32 %v2275_v52, %v2277_v53 }
 0x110   :  { %v585_v45 = vpop.f32.mrf.mxu0  ;;  %v626_v0 = vpop.f32.mrf.mxu1 }
 0x111   :  { %v633_v49 = vadd.f32 %v585_v45, %v212_v19  ;;  %v635_v19 = vadd.f32 %v626_v0, %v285_v5 }
 0x112   :  { %v587_v59 = vpop.f32.mrf.mxu0  ;;  %v628_v50 = vpop.f32.mrf.mxu1 }
 0x113   :  { %v1656_v2 = vmul.f32 -1.442695, %v633_v49  ;;  %v634_v54 = vadd.f32 %v587_v59, %v214_v46  ;;  %v636_v1 = vadd.f32 %v628_v50, %v287_v57 }
 0x114   :  { %v589_v48 = vpop.f32.mrf.mxu0  ;;  %v630_v60 = vpop.f32.mrf.mxu1 }
 0x115   :  { %1801 = vpow2.f32 %v1656_v2  ;;  %v1657_v47 = vmul.f32 -1.442695, %v634_v54  ;;  %v1658_v55 = vmul.f32 -1.442695, %v636_v1  ;;  %v2711_v48 = vmov 0  }
 0x116   :  { %v590_v8 = vpop.f32.mrf.mxu0  ;;  %v631_v51 = vpop.f32.mrf.mxu1 }
 0x117   :  { %1803 = vpow2.f32 %v1657_v47 }
 0x118   :  { %1805 = vpow2.f32 %v1658_v55 }
 0x122   :  { %v1802_v61 = vpop.eup %1801 }
 0x123   :  { %v640_v45 = vadd.f32 1.0, %v1802_v61 }
 0x124   :  { %v1804_v49 = vpop.eup %1803 }
 0x125   :  { %1807 = vrcp.f32 %v640_v45  ;;  %v646_v59 = vadd.f32 1.0, %v1804_v49  ;;  %v1806_v8 = vpop.eup %1805 }
 0x126   :  { %1809 = vtanh.f32 %v635_v19  ;;  %v653_v60 = vadd.f32 1.0, %v1806_v8 }
 0x127   :  { %1811 = vrcp.f32 %v646_v59 }
 0x128   :  { %1813 = vrcp.f32 %v653_v60 }
 0x132   :  { %v1808_v54 = vpop.eup %1807 }
 0x133   :  { %v1810_v47 = vpop.eup %1809 }
 0x134   :  { %v1812_v2 = vpop.eup %1811  ;;  %v657_v58 = vmul.f32 %v1810_v47, %v1808_v54 }
 0x135   :  { %v656_v56 = vmul.f32 0.0, %v1812_v2  ;;  %v1814_v0 = vpop.eup %1813 }
 0x137   :  { %v2361_v46 = vadd.f32 %v657_v58, %v656_v56 }
 0x139   :  { %1815 = vtanh.f32 %v2361_v46 }
 0x146   :  { %v1816_v52 = vpop.eup %1815 }
 0x147   :  { %v660_v53 = vmul.f32 %v1816_v52, %v1814_v0 }
 0x149   :  { %v665_v50 = vpack.c.bf16 %v660_v53, %v660_v53 }
 0x14b   :  { %699 = vmatmul.mubr.bf16.vlgmr.msra.gmra.mxu0 %v665_v50  ;;  %740 = vmatmul.mubr.bf16.vlgmr.msra.gmra.mxu1 %v665_v50 }
 0x14c   :  { %782 = vmatpush1.bf16.msra.mxu0 %v2115_v12  ;;  %823 = vmatpush1.bf16.msra.mxu1 %v2117_v13 }
 0x14d   :  { %783 = vmatprep.subr.bf16.mxu0 %v2120_v14  ;;  %824 = vmatprep.subr.bf16.mxu1 %v2123_v15 }
 0x14e   :  { %813 = vmatprep.mubr.bf16.mxu0 %v2711_v48  ;;  %854 = vmatprep.mubr.bf16.mxu1 %v2711_v48 }
 0x150   :  { %784 = vmatpush1.bf16.msra.mxu0 %v2127_v16  ;;  %825 = vmatpush1.bf16.msra.mxu1 %v2131_v17 }
 0x151   :  { %785 = vmatprep.subr.bf16.mxu0 %v2135_v18  ;;  %826 = vmatprep.subr.bf16.mxu1 %v2142_v20 }
 0x154   :  { %786 = vmatpush1.bf16.msra.mxu0 %v2144_v21  ;;  %827 = vmatpush1.bf16.msra.mxu1 %v2148_v22 }
 0x155   :  { %787 = vmatprep.subr.bf16.mxu0 %v2152_v23  ;;  %828 = vmatprep.subr.bf16.mxu1 %v2154_v24 }
 0x158   :  { %788 = vmatpush1.bf16.msra.mxu0 %v2158_v25  ;;  %829 = vmatpush1.bf16.msra.mxu1 %v2162_v26 }
 0x159   :  { %789 = vmatprep.subr.bf16.mxu0 %v2166_v27  ;;  %830 = vmatprep.subr.bf16.mxu1 %v2168_v28 }
 0x15c   :  { %790 = vmatpush1.bf16.msra.mxu0 %v2175_v30  ;;  %831 = vmatpush1.bf16.msra.mxu1 %v2177_v31 }
 0x15d   :  { %791 = vmatprep.subr.bf16.mxu0 %v2181_v32  ;;  %832 = vmatprep.subr.bf16.mxu1 %v2185_v33 }
 0x160   :  { %792 = vmatpush1.bf16.msra.mxu0 %v2189_v34  ;;  %833 = vmatpush1.bf16.msra.mxu1 %v2191_v35 }
 0x161   :  { %793 = vmatprep.subr.bf16.mxu0 %v2195_v36  ;;  %834 = vmatprep.subr.bf16.mxu1 %v2199_v37 }
 0x164   :  { %794 = vmatpush1.bf16.msra.mxu0 %v2206_v39  ;;  %835 = vmatpush1.bf16.msra.mxu1 %v2208_v40 }
 0x165   :  { %795 = vmatprep.subr.bf16.mxu0 %v2210_v41  ;;  %836 = vmatprep.subr.bf16.mxu1 %v2212_v42 }
 0x168   :  { %796 = vmatpush1.bf16.msra.mxu0 %v2222_v43  ;;  %837 = vmatpush1.bf16.msra.mxu1 %v2224_v44 }
 0x169   :  { %896 = vmatprep.subr.bf16.mxu0 %v2111_v10  ;;  %937 = vmatprep.subr.bf16.mxu1 %v2113_v11 }
 0x20b   :  { %v700_v51 = vpop.f32.mrf.mxu0  ;;  %v741_v57 = vpop.f32.mrf.mxu1 }
 0x20c   :  { %v748_v1 = vadd.f32 %v700_v51, %v2285_v62  ;;  %v750_v2 = vadd.f32 %v741_v57, %v2288_v63 }
 0x20d   :  { %v702_v5 = vpop.f32.mrf.mxu0  ;;  %v743_v55 = vpop.f32.mrf.mxu1 }
 0x20e   :  { %v1659_v61 = vmul.f32 -1.442695, %v748_v1  ;;  %v749_v19 = vadd.f32 %v702_v5, %v2290_v3  ;;  %v751_v47 = vadd.f32 %v743_v55, %v2293_v4 }
 0x20f   :  { %v704_v45 = vpop.f32.mrf.mxu0  ;;  %v745_v49 = vpop.f32.mrf.mxu1 }
 0x210   :  { %1817 = vpow2.f32 %v1659_v61  ;;  %v1660_v59 = vmul.f32 -1.442695, %v749_v19  ;;  %v1661_v60 = vmul.f32 -1.442695, %v751_v47 }
 0x211   :  { %v705_v8 = vpop.f32.mrf.mxu0  ;;  %v746_v54 = vpop.f32.mrf.mxu1 }
 0x212   :  { %1819 = vpow2.f32 %v1660_v59 }
 0x213   :  { %1821 = vtanh.f32 %v750_v2 }
 0x214   :  { %1823 = vpow2.f32 %v1661_v60 }
 0x21d   :  { %v1818_v56 = vpop.eup %1817 }
 0x21e   :  { %v755_v58 = vadd.f32 1.0, %v1818_v56 }
 0x21f   :  { %v1820_v62 = vpop.eup %1819 }
 0x220   :  { %1825 = vrcp.f32 %v755_v58  ;;  %v761_v0 = vadd.f32 1.0, %v1820_v62  ;;  %v1822_v3 = vpop.eup %1821 }
 0x221   :  { %v1824_v52 = vpop.eup %1823 }
 0x222   :  { %1827 = vrcp.f32 %v761_v0  ;;  %v768_v1 = vadd.f32 1.0, %v1824_v52  ;;  %v2712_v0 = vld [vmem:[#allocation13_spill] sm:$0xff] }
 0x224   :  { %1829 = vrcp.f32 %v768_v1 }
 0x22d   :  { %v1826_v53 = vpop.eup %1825 }
 0x22e   :  { %v772_v50 = vmul.f32 %v1826_v53, %v1822_v3 }
 0x22f   :  { %v1828_v51 = vpop.eup %1827 }
 0x230   :  { %v771_v5 = vmul.f32 %v1828_v51, %v2361_v46 }
 0x231   :  { %v1830_v63 = vpop.eup %1829 }
 0x232   :  { %v2403_v4 = vadd.f32 %v772_v50, %v771_v5 }
 0x234   :  { %1831 = vtanh.f32 %v2403_v4 }
 0x241   :  { %v1832_v57 = vpop.eup %1831 }
 0x242   :  { %v775_v55 = vmul.f32 %v1832_v57, %v1830_v63 }
 0x244   :  { %v780_v61 = vpack.c.bf16 %v775_v55, %v775_v55 }
 0x246   :  { %814 = vmatmul.mubr.bf16.vlgmr.msra.gmra.mxu0 %v780_v61  ;;  %855 = vmatmul.mubr.bf16.vlgmr.msra.gmra.mxu1 %v780_v61 }
 0x247   :  { %897 = vmatpush1.bf16.msra.mxu0 %v2115_v12  ;;  %938 = vmatpush1.bf16.msra.mxu1 %v2117_v13 }
 0x248   :  { %898 = vmatprep.subr.bf16.mxu0 %v2120_v14  ;;  %939 = vmatprep.subr.bf16.mxu1 %v2123_v15 }
 0x249   :  { %928 = vmatprep.mubr.bf16.mxu0 %v2711_v48  ;;  %969 = vmatprep.mubr.bf16.mxu1 %v2711_v48 }
 0x24b   :  { %899 = vmatpush1.bf16.msra.mxu0 %v2127_v16  ;;  %940 = vmatpush1.bf16.msra.mxu1 %v2131_v17 }
 0x24c   :  { %900 = vmatprep.subr.bf16.mxu0 %v2135_v18  ;;  %941 = vmatprep.subr.bf16.mxu1 %v2142_v20 }
 0x24f   :  { %901 = vmatpush1.bf16.msra.mxu0 %v2144_v21  ;;  %942 = vmatpush1.bf16.msra.mxu1 %v2148_v22 }
 0x250   :  { %902 = vmatprep.subr.bf16.mxu0 %v2152_v23  ;;  %943 = vmatprep.subr.bf16.mxu1 %v2154_v24 }
 0x253   :  { %903 = vmatpush1.bf16.msra.mxu0 %v2158_v25  ;;  %944 = vmatpush1.bf16.msra.mxu1 %v2162_v26 }
 0x254   :  { %904 = vmatprep.subr.bf16.mxu0 %v2166_v27  ;;  %945 = vmatprep.subr.bf16.mxu1 %v2168_v28 }
 0x257   :  { %905 = vmatpush1.bf16.msra.mxu0 %v2175_v30  ;;  %946 = vmatpush1.bf16.msra.mxu1 %v2177_v31 }
 0x258   :  { %906 = vmatprep.subr.bf16.mxu0 %v2181_v32  ;;  %947 = vmatprep.subr.bf16.mxu1 %v2185_v33 }
 0x25b   :  { %907 = vmatpush1.bf16.msra.mxu0 %v2189_v34  ;;  %948 = vmatpush1.bf16.msra.mxu1 %v2191_v35 }
 0x25c   :  { %908 = vmatprep.subr.bf16.mxu0 %v2195_v36  ;;  %949 = vmatprep.subr.bf16.mxu1 %v2199_v37 }
 0x25f   :  { %909 = vmatpush1.bf16.msra.mxu0 %v2206_v39  ;;  %950 = vmatpush1.bf16.msra.mxu1 %v2208_v40 }
 0x260   :  { %910 = vmatprep.subr.bf16.mxu0 %v2210_v41  ;;  %951 = vmatprep.subr.bf16.mxu1 %v2212_v42 }
 0x263   :  { %911 = vmatpush1.bf16.msra.mxu0 %v2222_v43  ;;  %952 = vmatpush1.bf16.msra.mxu1 %v2224_v44 }
 0x264   :  { %1011 = vmatprep.subr.bf16.mxu0 %v2111_v10  ;;  %1052 = vmatprep.subr.bf16.mxu1 %v2113_v11 }
 0x306   :  { %v815_v46 = vpop.f32.mrf.mxu0  ;;  %v856_v19 = vpop.f32.mrf.mxu1 }
 0x307   :  { %v863_v45 = vadd.f32 %v815_v46, %v2295_v7  ;;  %v865_v3 = vadd.f32 %v856_v19, %v2712_v0 }
 0x308   :  { %v817_v49 = vpop.f32.mrf.mxu0  ;;  %v858_v59 = vpop.f32.mrf.mxu1 }
 0x309   :  { %v1662_v8 = vmul.f32 -1.442695, %v863_v45  ;;  %v864_v54 = vadd.f32 %v817_v49, %v2300_v29  ;;  %v866_v62 = vadd.f32 %v858_v59, %v2303_v38 }
 0x30a   :  { %v819_v47 = vpop.f32.mrf.mxu0  ;;  %v860_v2 = vpop.f32.mrf.mxu1 }
 0x30b   :  { %1833 = vpow2.f32 %v1662_v8  ;;  %v1663_v60 = vmul.f32 -1.442695, %v864_v54  ;;  %v1664_v52 = vmul.f32 -1.442695, %v866_v62  ;;  %v2713_v8 = vld [vmem:[#allocation14_spill] sm:$0xff] }
 0x30c   :  { %v820_v56 = vpop.f32.mrf.mxu0  ;;  %v861_v58 = vpop.f32.mrf.mxu1 }
 0x30d   :  { %1835 = vpow2.f32 %v1663_v60  ;;  %v2714_v56 = vld [vmem:[#allocation16_spill] sm:$0xff] }
 0x30e   :  { %1837 = vtanh.f32 %v865_v3 }
 0x30f   :  { %1839 = vpow2.f32 %v1664_v52 }
 0x318   :  { %v1834_v53 = vpop.eup %1833 }
 0x319   :  { %v870_v50 = vadd.f32 1.0, %v1834_v53 }
 0x31a   :  { %v1836_v7 = vpop.eup %1835 }
 0x31b   :  { %1841 = vrcp.f32 %v870_v50  ;;  %v876_v51 = vadd.f32 1.0, %v1836_v7  ;;  %v1838_v29 = vpop.eup %1837  ;;  %v2715_v50 = vld [vmem:[#allocation17_spill] sm:$0xff]  ;;  %v2716_v7 = vld [vmem:[#allocation15_spill] sm:$0xff] }
 0x31c   :  { %v1840_v1 = vpop.eup %1839 }
 0x31d   :  { %1843 = vrcp.f32 %v876_v51  ;;  %v883_v55 = vadd.f32 1.0, %v1840_v1 }
 0x31f   :  { %1845 = vrcp.f32 %v883_v55 }
 0x328   :  { %v1842_v5 = vpop.eup %1841 }
 0x329   :  { %v887_v63 = vmul.f32 %v1842_v5, %v1838_v29 }
 0x32a   :  { %v1844_v57 = vpop.eup %1843 }
 0x32b   :  { %v886_v61 = vmul.f32 %v1844_v57, %v2403_v4 }
 0x32c   :  { %v1846_v46 = vpop.eup %1845 }
 0x32d   :  { %v2445_v38 = vadd.f32 %v887_v63, %v886_v61 }
 0x32f   :  { %1847 = vtanh.f32 %v2445_v38 }
 0x33c   :  { %v1848_v19 = vpop.eup %1847 }
 0x33d   :  { %v890_v45 = vmul.f32 %v1848_v19, %v1846_v46 }
 0x33f   :  { %v895_v49 = vpack.c.bf16 %v890_v45, %v890_v45 }
 0x341   :  { %929 = vmatmul.mubr.bf16.vlgmr.msra.gmra.mxu0 %v895_v49  ;;  %970 = vmatmul.mubr.bf16.vlgmr.msra.gmra.mxu1 %v895_v49 }
 0x342   :  { %1012 = vmatpush1.bf16.msra.mxu0 %v2115_v12  ;;  %1053 = vmatpush1.bf16.msra.mxu1 %v2117_v13 }
 0x343   :  { %1013 = vmatprep.subr.bf16.mxu0 %v2120_v14  ;;  %1054 = vmatprep.subr.bf16.mxu1 %v2123_v15 }
 0x344   :  { %1043 = vmatprep.mubr.bf16.mxu0 %v2711_v48  ;;  %1084 = vmatprep.mubr.bf16.mxu1 %v2711_v48 }
 0x346   :  { %1014 = vmatpush1.bf16.msra.mxu0 %v2127_v16  ;;  %1055 = vmatpush1.bf16.msra.mxu1 %v2131_v17 }
 0x347   :  { %1015 = vmatprep.subr.bf16.mxu0 %v2135_v18  ;;  %1056 = vmatprep.subr.bf16.mxu1 %v2142_v20 }
 0x34a   :  { %1016 = vmatpush1.bf16.msra.mxu0 %v2144_v21  ;;  %1057 = vmatpush1.bf16.msra.mxu1 %v2148_v22 }
 0x34b   :  { %1017 = vmatprep.subr.bf16.mxu0 %v2152_v23  ;;  %1058 = vmatprep.subr.bf16.mxu1 %v2154_v24 }
 0x34e   :  { %1018 = vmatpush1.bf16.msra.mxu0 %v2158_v25  ;;  %1059 = vmatpush1.bf16.msra.mxu1 %v2162_v26 }
 0x34f   :  { %1019 = vmatprep.subr.bf16.mxu0 %v2166_v27  ;;  %1060 = vmatprep.subr.bf16.mxu1 %v2168_v28 }
 0x352   :  { %1020 = vmatpush1.bf16.msra.mxu0 %v2175_v30  ;;  %1061 = vmatpush1.bf16.msra.mxu1 %v2177_v31 }
 0x353   :  { %1021 = vmatprep.subr.bf16.mxu0 %v2181_v32  ;;  %1062 = vmatprep.subr.bf16.mxu1 %v2185_v33 }
 0x356   :  { %1022 = vmatpush1.bf16.msra.mxu0 %v2189_v34  ;;  %1063 = vmatpush1.bf16.msra.mxu1 %v2191_v35 }
 0x357   :  { %1023 = vmatprep.subr.bf16.mxu0 %v2195_v36  ;;  %1064 = vmatprep.subr.bf16.mxu1 %v2199_v37 }
 0x35a   :  { %1024 = vmatpush1.bf16.msra.mxu0 %v2206_v39  ;;  %1065 = vmatpush1.bf16.msra.mxu1 %v2208_v40 }
 0x35b   :  { %1025 = vmatprep.subr.bf16.mxu0 %v2210_v41  ;;  %1066 = vmatprep.subr.bf16.mxu1 %v2212_v42 }
 0x35e   :  { %1026 = vmatpush1.bf16.msra.mxu0 %v2222_v43  ;;  %1067 = vmatpush1.bf16.msra.mxu1 %v2224_v44 }
 0x35f   :  { %1126 = vmatprep.subr.bf16.mxu0 %v2111_v10  ;;  %1167 = vmatprep.subr.bf16.mxu1 %v2113_v11 }
 0x401   :  { %v930_v4 = vpop.f32.mrf.mxu0  ;;  %v971_v59 = vpop.f32.mrf.mxu1 }
 0x402   :  { %v978_v54 = vadd.f32 %v930_v4, %v2713_v8  ;;  %v980_v11 = vadd.f32 %v971_v59, %v2716_v7  ;;  %v2545_v7 = vld [vmem:[#allocation6 + $0xcc] ss:$16 sps:$4 sm:$0xff]  }
 0x403   :  { %v932_v47 = vpop.f32.mrf.mxu0  ;;  %v973_v2 = vpop.f32.mrf.mxu1 }
 0x404   :  { %v1665_v60 = vmul.f32 -1.442695, %v978_v54  ;;  %v979_v58 = vadd.f32 %v932_v47, %v2714_v56  ;;  %v981_v10 = vadd.f32 %v973_v2, %v2715_v50  ;;  %v2539_v50 = vld [vmem:[#allocation6 + $0xe8] ss:$16 sps:$4 sm:$0xff]  }
 0x405   :  { %v934_v62 = vpop.f32.mrf.mxu0  ;;  %v975_v0 = vpop.f32.mrf.mxu1 }
 0x406   :  { %1849 = vpow2.f32 %v1665_v60  ;;  %v1666_v3 = vmul.f32 -1.442695, %v979_v58  ;;  %v1667_v51 = vmul.f32 -1.442695, %v981_v10  ;;  %v2542_v10 = vld [vmem:[#allocation6 + $0xc4] ss:$16 sps:$4 sm:$0xff]  }
 0x407   :  { %v935_v52 = vpop.f32.mrf.mxu0  ;;  %v976_v53 = vpop.f32.mrf.mxu1 }
 0x408   :  { %1851 = vpow2.f32 %v1666_v3  ;;  %v2536_v53 = vld [vmem:[#allocation6 + $0xe0] ss:$16 sps:$4 sm:$0xff]  }
 0x409   :  { %1853 = vtanh.f32 %v980_v11  ;;  %v2550_v11 = vld [vmem:[#allocation6 + $0xc0] ss:$16 sps:$4 sm:$0xff]  }
 0x40a   :  { %1855 = vpow2.f32 %v1667_v51  ;;  %v2553_v51 = vld [vmem:[#allocation6 + $0xc8] ss:$16 sps:$4 sm:$0xff]  }
 0x413   :  { %v1850_v29 = vpop.eup %1849 }
 0x414   :  { %v985_v1 = vadd.f32 1.0, %v1850_v29  ;;  %v2556_v29 = vld [vmem:[#allocation6 + $0xa4] ss:$16 sps:$4 sm:$0xff]  }
 0x415   :  { %v1852_v5 = vpop.eup %1851 }
 0x416   :  { %1857 = vrcp.f32 %v985_v1  ;;  %v991_v63 = vadd.f32 1.0, %v1852_v5  ;;  %v1854_v57 = vpop.eup %1853  ;;  %v2559_v1 = vld [vmem:[#allocation6 + $0xac] ss:$16 sps:$4 sm:$0xff]   ;;  %v2562_v5 = vld [vmem:[#allocation6 + $0xa0] ss:$16 sps:$4 sm:$0xff]  }
 0x417   :  { %v1856_v55 = vpop.eup %1855 }
 0x418   :  { %1859 = vrcp.f32 %v991_v63  ;;  %v998_v45 = vadd.f32 1.0, %v1856_v55  ;;  %v2565_v63 = vld [vmem:[#allocation6 + $0xa8] ss:$16 sps:$4 sm:$0xff]   ;;  %v2571_v55 = vld [vmem:[#allocation6 + $0x8c] ss:$16 sps:$4 sm:$0xff]  }
 0x41a   :  { %1861 = vrcp.f32 %v998_v45  ;;  %v2583_v45 = vld [vmem:[#allocation6 + $0x6c] ss:$16 sps:$4 sm:$0xff]  }
 0x423   :  { %v1858_v61 = vpop.eup %1857 }
 0x424   :  { %v1002_v46 = vmul.f32 %v1858_v61, %v1854_v57  ;;  %v2568_v57 = vld [vmem:[#allocation6 + $0x84] ss:$16 sps:$4 sm:$0xff]   ;;  %v2574_v61 = vld [vmem:[#allocation6 + $0x80] ss:$16 sps:$4 sm:$0xff]  }
 0x425   :  { %v1860_v19 = vpop.eup %1859 }
 0x426   :  { %v1001_v49 = vmul.f32 %v1860_v19, %v2445_v38  ;;  %v2580_v19 = vld [vmem:[#allocation6 + $0x64] ss:$16 sps:$4 sm:$0xff]  }
 0x427   :  { %v1862_v59 = vpop.eup %1861 }
 0x428   :  { %v2487_v4 = vadd.f32 %v1002_v46, %v1001_v49  ;;  %v2577_v46 = vld [vmem:[#allocation6 + $0x88] ss:$16 sps:$4 sm:$0xff]   ;;  %v2586_v49 = vld [vmem:[#allocation6 + $0x60] ss:$16 sps:$4 sm:$0xff]  }
 0x42a   :  { %1863 = vtanh.f32 %v2487_v4 }
 0x437   :  { %v1864_v8 = vpop.eup %1863 }
 0x438   :  { %v1005_v54 = vmul.f32 %v1864_v8, %v1862_v59  ;;  %v2592_v59 = vld [vmem:[#allocation6 + $0x44] ss:$16 sps:$4 sm:$0xff]   ;;  %v2595_v8 = vld [vmem:[#allocation6 + $0x4c] ss:$16 sps:$4 sm:$0xff]  }
 0x43a   :  { %v1010_v47 = vpack.c.bf16 %v1005_v54, %v1005_v54  ;;  %v2598_v54 = vld [vmem:[#allocation6 + $0x40] ss:$16 sps:$4 sm:$0xff]  }
 0x43c   :  { %1044 = vmatmul.mubr.bf16.vlgmr.msra.gmra.mxu0 %v1010_v47  ;;  %1085 = vmatmul.mubr.bf16.vlgmr.msra.gmra.mxu1 %v1010_v47  ;;  %v2601_v47 = vld [vmem:[#allocation6 + $0x48] ss:$16 sps:$4 sm:$0xff]  }
 0x43d   :  { %1127 = vmatpush1.bf16.msra.mxu0 %v2115_v12  ;;  %1168 = vmatpush1.bf16.msra.mxu1 %v2117_v13  ;;  %v2522_v12 = vld [vmem:[#allocation6 + $0xe4] ss:$16 sps:$4 sm:$0xff]   ;;  %v2525_v13 = vld [vmem:[#allocation6 + $0xec] ss:$16 sps:$4 sm:$0xff]  }
 0x43e   :  { %1128 = vmatprep.subr.bf16.mxu0 %v2120_v14  ;;  %1169 = vmatprep.subr.bf16.mxu1 %v2123_v15 }
 0x43f   :  { %1158 = vmatprep.mubr.bf16.mxu0 %v2711_v48  ;;  %1199 = vmatprep.mubr.bf16.mxu1 %v2711_v48 }
 0x441   :  { %1129 = vmatpush1.bf16.msra.mxu0 %v2127_v16  ;;  %1170 = vmatpush1.bf16.msra.mxu1 %v2131_v17  ;;  %v2717_v16 = vld [vmem:[#allocation18_spill] sm:$0xff] }
 0x442   :  { %1130 = vmatprep.subr.bf16.mxu0 %v2135_v18  ;;  %1171 = vmatprep.subr.bf16.mxu1 %v2142_v20 }
 0x445   :  { %1131 = vmatpush1.bf16.msra.mxu0 %v2144_v21  ;;  %1172 = vmatpush1.bf16.msra.mxu1 %v2148_v22  ;;  %v2718_v22 = vld [vmem:[#allocation20_spill] sm:$0xff] }
 0x446   :  { %1132 = vmatprep.subr.bf16.mxu0 %v2152_v23  ;;  %1173 = vmatprep.subr.bf16.mxu1 %v2154_v24 }
 0x449   :  { %1133 = vmatpush1.bf16.msra.mxu0 %v2158_v25  ;;  %1174 = vmatpush1.bf16.msra.mxu1 %v2162_v26 }
 0x44a   :  { %1134 = vmatprep.subr.bf16.mxu0 %v2166_v27  ;;  %1175 = vmatprep.subr.bf16.mxu1 %v2168_v28 }
 0x44d   :  { %1135 = vmatpush1.bf16.msra.mxu0 %v2175_v30  ;;  %1176 = vmatpush1.bf16.msra.mxu1 %v2177_v31  ;;  %v2719_v30 = vld [vmem:[#allocation21_spill] sm:$0xff] }
 0x44e   :  { %1136 = vmatprep.subr.bf16.mxu0 %v2181_v32  ;;  %1177 = vmatprep.subr.bf16.mxu1 %v2185_v33  ;;  %v2720_v32 = vld [vmem:[#allocation19_spill] sm:$0xff] }
 0x451   :  { %1137 = vmatpush1.bf16.msra.mxu0 %v2189_v34  ;;  %1178 = vmatpush1.bf16.msra.mxu1 %v2191_v35 }
 0x452   :  { %1138 = vmatprep.subr.bf16.mxu0 %v2195_v36  ;;  %1179 = vmatprep.subr.bf16.mxu1 %v2199_v37 }
 0x455   :  { %1139 = vmatpush1.bf16.msra.mxu0 %v2206_v39  ;;  %1180 = vmatpush1.bf16.msra.mxu1 %v2208_v40 }
 0x456   :  { %1140 = vmatprep.subr.bf16.mxu0 %v2210_v41  ;;  %1181 = vmatprep.subr.bf16.mxu1 %v2212_v42 }
 0x459   :  { %1141 = vmatpush1.bf16.msra.mxu0 %v2222_v43  ;;  %1182 = vmatpush1.bf16.msra.mxu1 %v2224_v44 }
 0x45a   :  { %1241 = vmatprep.subr.bf16.mxu0 %v2522_v12  ;;  %1282 = vmatprep.subr.bf16.mxu1 %v2525_v13 }
 0x4fc   :  { %v1045_v14 = vpop.f32.mrf.mxu0  ;;  %v1086_v15 = vpop.f32.mrf.mxu1 }
 0x4fd   :  { %v1093_v17 = vadd.f32 %v1045_v14, %v2717_v16  ;;  %v1095_v33 = vadd.f32 %v1086_v15, %v2720_v32  ;;  %v2604_v14 = vld [vmem:[#allocation6 + $0x24] ss:$16 sps:$4 sm:$0xff]   ;;  %v2607_v15 = vld [vmem:[#allocation6 + $0x2c] ss:$16 sps:$4 sm:$0xff]   ;;  %v2610_v16 = vld [vmem:[#allocation6 + $0x20] ss:$16 sps:$4 sm:$0xff]  }
 0x4fe   :  { %v1047_v18 = vpop.f32.mrf.mxu0  ;;  %v1088_v20 = vpop.f32.mrf.mxu1 }
 0x4ff   :  { %v1668_v21 = vmul.f32 -1.442695, %v1093_v17  ;;  %v1094_v23 = vadd.f32 %v1047_v18, %v2718_v22  ;;  %v1096_v31 = vadd.f32 %v1088_v20, %v2719_v30  ;;  %v2613_v17 = vld [vmem:[#allocation6 + $0x28] ss:$16 sps:$4 sm:$0xff]   ;;  %v2616_v18 = vld [vmem:[#allocation6 + $0x4] ss:$16 sps:$4 sm:$0xff]  }
 0x500   :  { %v1049_v24 = vpop.f32.mrf.mxu0  ;;  %v1090_v25 = vpop.f32.mrf.mxu1  ;;  %v2619_v20 = vld [vmem:[#allocation6 + $0xc] ss:$16 sps:$4 sm:$0xff]  }
 0x501   :  { %1865 = vpow2.f32 %v1668_v21  ;;  %v1669_v26 = vmul.f32 -1.442695, %v1094_v23  ;;  %v1670_v34 = vmul.f32 -1.442695, %v1096_v31  ;;  %v2721_v23 = vld [vmem:[#allocation22_spill] sm:$0xff] }
 0x502   :  { %v1050_v27 = vpop.f32.mrf.mxu0  ;;  %v1091_v28 = vpop.f32.mrf.mxu1 }
 0x503   :  { %1867 = vpow2.f32 %v1669_v26  ;;  %v2722_v28 = vld [vmem:[#allocation24_spill] sm:$0xff] }
 0x504   :  { %1869 = vtanh.f32 %v1095_v33 }
 0x505   :  { %1871 = vpow2.f32 %v1670_v34 }
 0x50e   :  { %v1866_v35 = vpop.eup %1865 }
 0x50f   :  { %v1100_v36 = vadd.f32 1.0, %v1866_v35  ;;  %v2724_v35 = vld [vmem:[#allocation23_spill] sm:$0xff] }
 0x510   :  { %v1868_v37 = vpop.eup %1867 }
 0x511   :  { %1873 = vrcp.f32 %v1100_v36  ;;  %v1106_v39 = vadd.f32 1.0, %v1868_v37  ;;  %v1870_v40 = vpop.eup %1869 }
 0x512   :  { %v1872_v41 = vpop.eup %1871 }
 0x513   :  { %1875 = vrcp.f32 %v1106_v39  ;;  %v1113_v60 = vadd.f32 1.0, %v1872_v41 }
 0x515   :  { %1877 = vrcp.f32 %v1113_v60 }
 0x51e   :  { %v1874_v42 = vpop.eup %1873 }
 0x51f   :  { %v1117_v38 = vmul.f32 %v1874_v42, %v1870_v40 }
 0x520   :  { %v1876_v2 = vpop.eup %1875 }
 0x521   :  { %v1116_v56 = vmul.f32 %v1876_v2, %v2487_v4  ;;  %v2589_v4 = vld [vmem:[#allocation6 + $0x68] ss:$16 sps:$4 sm:$0xff]  }
 0x522   :  { %v1878_v62 = vpop.eup %1877 }
 0x523   :  { %v2533_v58 = vadd.f32 %v1117_v38, %v1116_v56 }
 0x525   :  { %1879 = vtanh.f32 %v2533_v58 }
 0x532   :  { %v1880_v0 = vpop.eup %1879 }
 0x533   :  { %v1120_v3 = vmul.f32 %v1880_v0, %v1878_v62 }
 0x535   :  { %v1125_v52 = vpack.c.bf16 %v1120_v3, %v1120_v3 }
 0x537   :  { %1159 = vmatmul.mubr.bf16.vlgmr.msra.gmra.mxu0 %v1125_v52  ;;  %1200 = vmatmul.mubr.bf16.vlgmr.msra.gmra.mxu1 %v1125_v52 }
 0x538   :  { %1242 = vmatpush1.bf16.msra.mxu0 %v2536_v53  ;;  %1283 = vmatpush1.bf16.msra.mxu1 %v2539_v50 }
 0x539   :  { %1243 = vmatprep.subr.bf16.mxu0 %v2542_v10  ;;  %1284 = vmatprep.subr.bf16.mxu1 %v2545_v7 }
 0x53a   :  { %1273 = vmatprep.mubr.bf16.mxu0 %v2711_v48  ;;  %1314 = vmatprep.mubr.bf16.mxu1 %v2711_v48 }
 0x53c   :  { %1244 = vmatpush1.bf16.msra.mxu0 %v2550_v11  ;;  %1285 = vmatpush1.bf16.msra.mxu1 %v2553_v51 }
 0x53d   :  { %1245 = vmatprep.subr.bf16.mxu0 %v2556_v29  ;;  %1286 = vmatprep.subr.bf16.mxu1 %v2559_v1 }
 0x540   :  { %1246 = vmatpush1.bf16.msra.mxu0 %v2562_v5  ;;  %1287 = vmatpush1.bf16.msra.mxu1 %v2565_v63 }
 0x541   :  { %1247 = vmatprep.subr.bf16.mxu0 %v2568_v57  ;;  %1288 = vmatprep.subr.bf16.mxu1 %v2571_v55 }
 0x544   :  { %1248 = vmatpush1.bf16.msra.mxu0 %v2574_v61  ;;  %1289 = vmatpush1.bf16.msra.mxu1 %v2577_v46 }
 0x545   :  { %1249 = vmatprep.subr.bf16.mxu0 %v2580_v19  ;;  %1290 = vmatprep.subr.bf16.mxu1 %v2583_v45 }
 0x548   :  { %1250 = vmatpush1.bf16.msra.mxu0 %v2586_v49  ;;  %1291 = vmatpush1.bf16.msra.mxu1 %v2589_v4 }
 0x549   :  { %1251 = vmatprep.subr.bf16.mxu0 %v2592_v59  ;;  %1292 = vmatprep.subr.bf16.mxu1 %v2595_v8 }
 0x54c   :  { %1252 = vmatpush1.bf16.msra.mxu0 %v2598_v54  ;;  %1293 = vmatpush1.bf16.msra.mxu1 %v2601_v47 }
 0x54d   :  { %1253 = vmatprep.subr.bf16.mxu0 %v2604_v14  ;;  %1294 = vmatprep.subr.bf16.mxu1 %v2607_v15 }
 0x550   :  { %1254 = vmatpush1.bf16.msra.mxu0 %v2610_v16  ;;  %1295 = vmatpush1.bf16.msra.mxu1 %v2613_v17 }
 0x551   :  { %1255 = vmatprep.subr.bf16.mxu0 %v2616_v18  ;;  %1296 = vmatprep.subr.bf16.mxu1 %v2619_v20 }
 0x554   :  { %1256 = vmatpush1.bf16.msra.mxu0 %v2222_v43  ;;  %1297 = vmatpush1.bf16.msra.mxu1 %v2224_v44  ;;  %v2723_v44 = vld [vmem:[#allocation25_spill] sm:$0xff] }
 0x555   :  { %1356 = vmatprep.subr.bf16.mxu0 %v2522_v12  ;;  %1397 = vmatprep.subr.bf16.mxu1 %v2525_v13 }
 0x5f7   :  { %v1160_v21 = vpop.f32.mrf.mxu0  ;;  %v1201_v22 = vpop.f32.mrf.mxu1 }
 0x5f8   :  { %v1208_v24 = vadd.f32 %v1160_v21, %v2721_v23  ;;  %v1210_v13 = vadd.f32 %v1201_v22, %v2724_v35  ;;  %v1798_v35 = vld [vmem:[#allocation8 + $0x10] sm:$0xff]  }
 0x5f9   :  { %v1162_v25 = vpop.f32.mrf.mxu0  ;;  %v1203_v26 = vpop.f32.mrf.mxu1 }
 0x5fa   :  { %v1671_v27 = vmul.f32 -1.442695, %v1208_v24  ;;  %v1209_v30 = vadd.f32 %v1162_v25, %v2722_v28  ;;  %v1211_v12 = vadd.f32 %v1203_v26, %v2723_v44  ;;  %v1796_v44 = vld [vmem:[#allocation8 + $0x20] sm:$0xff]  }
 0x5fb   :  { %v1164_v31 = vpop.f32.mrf.mxu0  ;;  %v1205_v32 = vpop.f32.mrf.mxu1 }
 0x5fc   :  { %1881 = vpow2.f32 %v1671_v27  ;;  %v1672_v33 = vmul.f32 -1.442695, %v1209_v30  ;;  %v1673_v36 = vmul.f32 -1.442695, %v1211_v12  ;;  %v1793_v32 = vld [vmem:[#allocation8 + $0x38] sm:$0xff]  }
 0x5fd   :  { %v1165_v43 = vpop.f32.mrf.mxu0  ;;  %v1206_v34 = vpop.f32.mrf.mxu1  ;;  %v1797_v12 = vld [vmem:[#allocation8 + $0x18] sm:$0xff]  }
 0x5fe   :  { %1883 = vpow2.f32 %v1672_v33  ;;  %v2059_v33 = vmov 0.0   ;;  %v1794_v43 = vld [vmem:[#allocation8 + $0x30] sm:$0xff]   ;;  %v1795_v34 = vld [vmem:[#allocation8 + $0x28] sm:$0xff]  }
 0x5ff   :  { %1885 = vtanh.f32 %v1210_v13  ;;  %v1799_v13 = vld [vmem:[#allocation8 + $0x8] sm:$0xff]  }
 0x600   :  { %1887 = vpow2.f32 %v1673_v36  ;;  %v1800_v36 = vld [vmem:[#allocation8] sm:$0xff]  }
 0x609   :  { %v1882_v37 = vpop.eup %1881 }
 0x60a   :  { %v1215_v39 = vadd.f32 1.0, %v1882_v37 }
 0x60b   :  { %v1884_v40 = vpop.eup %1883 }
 0x60c   :  { %1889 = vrcp.f32 %v1215_v39  ;;  %v1221_v41 = vadd.f32 1.0, %v1884_v40  ;;  %v1886_v42 = vpop.eup %1885  ;;  %v2729_v40 = vld [vmem:[#allocation30_spill] sm:$0xff] }
 0x60d   :  { %v1888_v38 = vpop.eup %1887 }
 0x60e   :  { %1891 = vrcp.f32 %v1221_v41  ;;  %v1228_v62 = vadd.f32 1.0, %v1888_v38 }
 0x610   :  { %1893 = vrcp.f32 %v1228_v62 }
 0x619   :  { %v1890_v2 = vpop.eup %1889 }
 0x61a   :  { %v1232_v60 = vmul.f32 %v1890_v2, %v1886_v42 }
 0x61b   :  { %v1892_v56 = vpop.eup %1891 }
 0x61c   :  { %v1231_v0 = vmul.f32 %v1892_v56, %v2533_v58  ;;  %v1964_v58 = vld [vmem:[#allocation6 + $0x8] ss:$16 sps:$4 sm:$0xff]  }
 0x61d   :  { %v1894_v52 = vpop.eup %1893 }
 0x61e   :  { %v2631_v3 = vadd.f32 %v1232_v60, %v1231_v0 }
 0x620   :  { %1895 = vtanh.f32 %v2631_v3 }
 0x62d   :  { %v1896_v21 = vpop.eup %1895 }
 0x62e   :  { %v1235_v22 = vmul.f32 %v1896_v21, %v1894_v52 }
 0x630   :  { %v1240_v23 = vpack.c.bf16 %v1235_v22, %v1235_v22  ;;  %v2730_v22 = vld [vmem:[#allocation31_spill] sm:$0xff] }
 0x632   :  { %1274 = vmatmul.mubr.bf16.vlgmr.msra.gmra.mxu0 %v1240_v23  ;;  %1315 = vmatmul.mubr.bf16.vlgmr.msra.gmra.mxu1 %v1240_v23 }
 0x633   :  { %1357 = vmatpush1.bf16.msra.mxu0 %v2536_v53  ;;  %1398 = vmatpush1.bf16.msra.mxu1 %v2539_v50 }
 0x634   :  { %1358 = vmatprep.subr.bf16.mxu0 %v2542_v10  ;;  %1399 = vmatprep.subr.bf16.mxu1 %v2545_v7  ;;  %v2725_v10 = vld [vmem:[#allocation26_spill] sm:$0xff] }
 0x635   :  { %1388 = vmatprep.mubr.bf16.mxu0 %v2711_v48  ;;  %1429 = vmatprep.mubr.bf16.mxu1 %v2711_v48  ;;  %v1963_v48 = vld [vmem:[#allocation6] ss:$16 sps:$4 sm:$0xff]  }
 0x637   :  { %1359 = vmatpush1.bf16.msra.mxu0 %v2550_v11  ;;  %1400 = vmatpush1.bf16.msra.mxu1 %v2553_v51 }
 0x638   :  { %1360 = vmatprep.subr.bf16.mxu0 %v2556_v29  ;;  %1401 = vmatprep.subr.bf16.mxu1 %v2559_v1  ;;  %v2726_v1 = vld [vmem:[#allocation28_spill] sm:$0xff] }
 0x63b   :  { %1361 = vmatpush1.bf16.msra.mxu0 %v2562_v5  ;;  %1402 = vmatpush1.bf16.msra.mxu1 %v2565_v63 }
 0x63c   :  { %1362 = vmatprep.subr.bf16.mxu0 %v2568_v57  ;;  %1403 = vmatprep.subr.bf16.mxu1 %v2571_v55 }
 0x63f   :  { %1363 = vmatpush1.bf16.msra.mxu0 %v2574_v61  ;;  %1404 = vmatpush1.bf16.msra.mxu1 %v2577_v46 }
 0x640   :  { %1364 = vmatprep.subr.bf16.mxu0 %v2580_v19  ;;  %1405 = vmatprep.subr.bf16.mxu1 %v2583_v45  ;;  %v2727_v19 = vld [vmem:[#allocation29_spill] sm:$0xff] }
 0x643   :  { %1365 = vmatpush1.bf16.msra.mxu0 %v2586_v49  ;;  %1406 = vmatpush1.bf16.msra.mxu1 %v2589_v4  ;;  %v2728_v49 = vld [vmem:[#allocation27_spill] sm:$0xff] }
 0x644   :  { %1366 = vmatprep.subr.bf16.mxu0 %v2592_v59  ;;  %1407 = vmatprep.subr.bf16.mxu1 %v2595_v8 }
 0x647   :  { %1367 = vmatpush1.bf16.msra.mxu0 %v2598_v54  ;;  %1408 = vmatpush1.bf16.msra.mxu1 %v2601_v47 }
 0x648   :  { %1368 = vmatprep.subr.bf16.mxu0 %v2604_v14  ;;  %1409 = vmatprep.subr.bf16.mxu1 %v2607_v15 }
 0x64b   :  { %1369 = vmatpush1.bf16.msra.mxu0 %v2610_v16  ;;  %1410 = vmatpush1.bf16.msra.mxu1 %v2613_v17 }
 0x64c   :  { %1370 = vmatprep.subr.bf16.mxu0 %v2616_v18  ;;  %1411 = vmatprep.subr.bf16.mxu1 %v2619_v20 }
 0x64f   :  { %1371 = vmatpush1.bf16.msra.mxu0 %v1963_v48  ;;  %1412 = vmatpush1.bf16.msra.mxu1 %v1964_v58 }
 0x650   :  { %1698 = vmatprep.subr.bf16.mxu0 %v2059_v33 }
 0x6f2   :  { %v1275_v53 = vpop.f32.mrf.mxu0  ;;  %v1316_v50 = vpop.f32.mrf.mxu1 }
 0x6f3   :  { %v1323_v7 = vadd.f32 %v1275_v53, %v2725_v10  ;;  %v1325_v4 = vadd.f32 %v1316_v50, %v2728_v49 }
 0x6f4   :  { %v1277_v11 = vpop.f32.mrf.mxu0  ;;  %v1318_v51 = vpop.f32.mrf.mxu1 }
 0x6f5   :  { %v1674_v29 = vmul.f32 -1.442695, %v1323_v7  ;;  %v1324_v5 = vadd.f32 %v1277_v11, %v2726_v1  ;;  %v1326_v45 = vadd.f32 %v1318_v51, %v2727_v19 }
 0x6f6   :  { %v1279_v63 = vpop.f32.mrf.mxu0  ;;  %v1320_v57 = vpop.f32.mrf.mxu1 }
 0x6f7   :  { %1897 = vpow2.f32 %v1674_v29  ;;  %v1675_v55 = vmul.f32 -1.442695, %v1324_v5  ;;  %v1676_v59 = vmul.f32 -1.442695, %v1326_v45 }
 0x6f8   :  { %v1280_v61 = vpop.f32.mrf.mxu0  ;;  %v1321_v46 = vpop.f32.mrf.mxu1 }
 0x6f9   :  { %1899 = vpow2.f32 %v1675_v55  ;;  %v1680_v46 = vld [vmem:[%s2688_s5] ss:$0 sm:$0xff]  ;;  %s2025_s5 = scalar_lea.vmem %s1595_s24, 128 }
 0x6fa   :  { %1901 = vtanh.f32 %v1325_v4  ;;  %p2026_p1 = scmp.ne.s32.totalorder %s1595_s24, %s2025_s5  ;;  %p2031_p3 = scmp.lt.s32.totalorder %s2025_s5, %s2025_s5 }
 0x6fb   :  { %1903 = vpow2.f32 %v1676_v59 }
 0x6fc   :  { %p2032_p4 = por %p2031_p3, %p2030_p2 }
 0x6fe   :  { %p2033_p5 = pnand %p2032_p4, %p2026_p1 }
 0x704   :  { %v1898_v8 = vpop.eup %1897 }
 0x705   :  { %v1330_v54 = vadd.f32 1.0, %v1898_v8 }
 0x706   :  { %v1900_v47 = vpop.eup %1899 }
 0x707   :  { %1905 = vrcp.f32 %v1330_v54  ;;  %v1336_v14 = vadd.f32 1.0, %v1900_v47  ;;  %v1902_v15 = vpop.eup %1901 }
 0x708   :  { %v1904_v16 = vpop.eup %1903 }
 0x709   :  { %1907 = vrcp.f32 %v1336_v14  ;;  %v1343_v24 = vadd.f32 1.0, %v1904_v16 }
 0x70b   :  { %1909 = vrcp.f32 %v1343_v24 }
 0x714   :  { %v1906_v17 = vpop.eup %1905 }
 0x715   :  { %v1347_v18 = vmul.f32 %v1906_v17, %v1902_v15 }
 0x716   :  { %v1908_v20 = vpop.eup %1907 }
 0x717   :  { %v1346_v25 = vmul.f32 %v1908_v20, %v2631_v3 }
 0x718   :  { %v1910_v27 = vpop.eup %1909 }
 0x719   :  { %v2669_v26 = vadd.f32 %v1347_v18, %v1346_v25 }
 0x71b   :  { %1911 = vtanh.f32 %v2669_v26 }
 0x728   :  { %v1912_v28 = vpop.eup %1911 }
 0x729   :  { %v1350_v30 = vmul.f32 %v1912_v28, %v1910_v27 }
 0x72b   :  { %v1355_v31 = vpack.c.bf16 %v1350_v30, %v1350_v30 }
 0x72d   :  { %1389 = vmatmul.mubr.bf16.vlgmr.msra.gmra.mxu0 %v1355_v31  ;;  %1430 = vmatmul.mubr.bf16.vlgmr.msra.gmra.mxu1 %v1355_v31 }
 0x72e   :  { %1699 = vmatpush3.bf16.msra.mxu0 %v1793_v32  ;;  %1714 = vmatprep.mubr.msk.bf16.mxu0 %vm2060_vm1, %v2059_v33 }
 0x72f   :  { %1700 = vmatprep.subr.bf16.mxu0 %v2059_v33 }
 0x732   :  { %1701 = vmatpush3.bf16.msra.mxu0 %v1794_v43 }
 0x733   :  { %1702 = vmatprep.subr.bf16.mxu0 %v2059_v33 }
 0x736   :  { %1703 = vmatpush3.bf16.msra.mxu0 %v1795_v34 }
 0x737   :  { %1704 = vmatprep.subr.bf16.mxu0 %v2059_v33 }
 0x73a   :  { %1705 = vmatpush3.bf16.msra.mxu0 %v1796_v44 }
 0x73b   :  { %1706 = vmatprep.subr.bf16.mxu0 %v2059_v33 }
 0x73e   :  { %1707 = vmatpush3.bf16.msra.mxu0 %v1797_v12 }
 0x73f   :  { %1708 = vmatprep.subr.bf16.mxu0 %v2059_v33 }
 0x742   :  { %1709 = vmatpush3.bf16.msra.mxu0 %v1798_v35 }
 0x743   :  { %1710 = vmatprep.subr.bf16.mxu0 %v2059_v33 }
 0x746   :  { %1711 = vmatpush3.bf16.msra.mxu0 %v1799_v13 }
 0x747   :  { %1712 = vmatprep.subr.bf16.mxu0 %v2059_v33 }
 0x74a   :  { %1713 = vmatpush3.bf16.msra.mxu0 %v1800_v36 }
 0x7ed   :  { %v1390_v37 = vpop.f32.mrf.mxu0  ;;  %v1431_v39 = vpop.f32.mrf.mxu1 }
 0x7ee   :  { %v1438_v41 = vadd.f32 %v1390_v37, %v2729_v40  ;;  %v1440_v23 = vadd.f32 %v1431_v39, %v2730_v22 }
 0x7ef   :  { %v1392_v42 = vpop.f32.mrf.mxu0  ;;  %v1433_v38 = vpop.f32.mrf.mxu1 }
 0x7f0   :  { %v1677_v2 = vmul.f32 -1.442695, %v1438_v41  ;;  %v1439_v60 = vadd.f32 %v1392_v42, %v2351_v6  ;;  %v1441_v21 = vadd.f32 %v1433_v38, %v2354_v9 }
 0x7f1   :  { %v1394_v56 = vpop.f32.mrf.mxu0  ;;  %v1435_v62 = vpop.f32.mrf.mxu1 }
 0x7f2   :  { %1913 = vpow2.f32 %v1677_v2  ;;  %v1678_v0 = vmul.f32 -1.442695, %v1439_v60  ;;  %v1679_v48 = vmul.f32 -1.442695, %v1441_v21 }
 0x7f3   :  { %v1395_v3 = vpop.f32.mrf.mxu0  ;;  %v1436_v52 = vpop.f32.mrf.mxu1 }
 0x7f4   :  { %1915 = vpow2.f32 %v1678_v0 }
 0x7f5   :  { %1917 = vtanh.f32 %v1440_v23 }
 0x7f6   :  { %1919 = vpow2.f32 %v1679_v48 }
 0x7ff   :  { %v1914_v58 = vpop.eup %1913 }
 0x800   :  { %v1445_v53 = vadd.f32 1.0, %v1914_v58 }
 0x801   :  { %v1916_v50 = vpop.eup %1915 }
 0x802   :  { %1921 = vrcp.f32 %v1445_v53  ;;  %v1451_v10 = vadd.f32 1.0, %v1916_v50  ;;  %v1918_v6 = vpop.eup %1917 }
 0x803   :  { %v1920_v7 = vpop.eup %1919 }
 0x804   :  { %1923 = vrcp.f32 %v1451_v10  ;;  %v1458_v1 = vadd.f32 1.0, %v1920_v7 }
 0x806   :  { %1925 = vrcp.f32 %v1458_v1 }
 0x80f   :  { %v1922_v11 = vpop.eup %1921 }
 0x810   :  { %v1462_v51 = vmul.f32 %v1922_v11, %v1918_v6 }
 0x811   :  { %v1924_v29 = vpop.eup %1923 }
 0x812   :  { %v1461_v5 = vmul.f32 %v1924_v29, %v2669_v26 }
 0x813   :  { %v1926_v63 = vpop.eup %1925 }
 0x814   :  { %v1463_v9 = vadd.f32 %v1462_v51, %v1461_v5 }
 0x816   :  { %1927 = vtanh.f32 %v1463_v9 }
 0x823   :  { %v1928_v57 = vpop.eup %1927 }
 0x824   :  { %v1465_v55 = vmul.f32 %v1928_v57, %v1926_v63 }
 0x826   :  { %v1466_v61 = vpack.c.bf16 %v1465_v55, %v1465_v55 }
 0x828   :  { %1715 = vmatmul.mubr.bf16.vlgmr.msra.gmra.mxu0 %v1466_v61 }
 0x8e8   :  { %v1572_v19 = vpop.f32.mrf.mxu0 }
 0x8e9   :  { %v1573_v45 = vadd.f32 %v1680_v46, %v1572_v19 }
 0x8ea   :  { %v1716_v49 = vpop.f32.mrf.mxu0 }
 0x8eb   :  { %1578 = vmax.xlane.f32.xlu0 %v1573_v45 }
 0x8ec   :  { %v1575_v4 = vpop.f32.mrf.mxu0 }
 0x8ee   :  { %v1717_v59 = vpop.f32.mrf.mxu0 }
 0x974   :  { %v1579_v8 = vpop.xlane.xlu0 %1578 }
 0x975   :  { %v1580_v54 = vsub.f32 %v1573_v45, %v1579_v8 }
 0x977   :  { %v1581_v47 = vmul.f32 1.442695, %v1580_v54 }
 0x979   :  { %1929 = vpow2.f32 %v1581_v47 }
 0x986   :  { %v1930_v14 = vpop.eup %1929 }
 0x987   :  { %1583 = vadd.xlane.f32.xlu0 %v1930_v14 }
 0xa10   :  { %v1584_v15 = vpop.xlane.xlu0 %1583 }
 0xa11   :  { %1931 = vrcp.f32 %v1584_v15 }
 0xa1e   :  { %v1932_v16 = vpop.eup %1931 }
 0xa1f   :  { %v1586_v17 = vmul.f32 %v1932_v16, %v1930_v14 }
 0xa21   :  { %1587 = vst [vmem:[#allocation9] sm:$0xff] %v1586_v17 }
 0xa22   :  { %2036 = shalt.err (!%p2033_p5)
}
 0xa23   :  { %1597 = dma.vmem_to_hbm [thread:$0]  %s1595_s24, 128, %s2689_s6, [#allocation5]  }
 0xa24   :  { %2049 = dma.done.wait [#allocation5], 128  }
 0xa25   :  { %2050 = vsyncadd [#allocation5], 4294967168 }
 0xa26   :  { %1601 = vsyncpa [#allocation4], 1 }
 0xa27   :  { %1602 = vsyncpa [#allocation7], 1 }
 0xa28   :  { %1603 = vsyncpa [#allocation5], 1 }

</bundles_post_ra>
